<compile_context>
chip_gen: v7x
topology: tpu7x:2x2x1
jax: 0.10.0
libtpu: 0.0.40
codegen_flags: <defaults>
</compile_context>

<pallas_src>
import jax
import jax.numpy as jnp
from jax import lax
from jax.experimental import pallas as pl
from jax.experimental.pallas import tpu as pltpu


# ----------------------------------------------------------------------------
# Fused kernel: 3 matmuls, everything per-tile stays on-core.
# ----------------------------------------------------------------------------
def _fused_kernel(x_ref, w1_ref, b1_ref, w2_ref, b2_ref, wf_ref, bf_ref, o_ref):
    # x_ref : (Bt, 729)   one batch tile, row = flattened 27x27 image
    # w1_ref: (729, 648)  conv1 folded to block-structured dense weight
    # b1_ref: (1, 648)
    # w2_ref: (648, 144)  conv2 folded (block-diagonal over the 9 output pos.)
    # b2_ref: (1, 144)
    # wf_ref: (144, 3)    fc weight, columns pre-permuted to PyTorch flatten order
    # bf_ref: (1, 3)
    # o_ref : (Bt, 3)
    x = x_ref[...]
    h1 = jnp.maximum(
        jnp.dot(x, w1_ref[...], preferred_element_type=jnp.float32) + b1_ref[...],
        0.0)                                                     # (Bt, 648)
    h2 = jnp.maximum(
        jnp.dot(h1, w2_ref[...], preferred_element_type=jnp.float32) + b2_ref[...],
        0.0)                                                     # (Bt, 144)
    o_ref[...] = (
        jnp.dot(h2, wf_ref[...], preferred_element_type=jnp.float32) + bf_ref[...]
    ).astype(o_ref.dtype)


def _pick_block_b(batch):
    """Batch tile: multiple of 8 (sublane), capped at 256 (M >= 256 on v6e/v7x)."""
    bt = 256
    if batch < bt:
        bt = max(8, ((batch + 7) // 8) * 8)
    return bt


# ----------------------------------------------------------------------------
# One-time weight preparation (fold conv structure into dense block weights).
# ----------------------------------------------------------------------------
def prepare_params(params):
    w1, b1 = params["w1"], params["b1"]          # (8,1,3,3), (8,)
    w2, b2 = params["w2"], params["b2"]          # (16,8,3,3), (16,)
    wf, bf = params["wf"], params["bf"]          # (3,144), (3,)
    f32 = jnp.float32
    eye3 = jnp.eye(3, dtype=f32)
    eye9 = jnp.eye(9, dtype=f32)

    # conv1: input col = (oh2,kh,p,ow2,kw,q) (natural 27x27 row-major order),
    #        output col = (oh2,ow2,kh,kw,c1)
    w1r = w1.reshape(8, 3, 3).astype(f32)                      # (c1, p, q)
    w1bd = jnp.einsum("aA,bB,cC,dD,kpq->abpcdqACBDk",
                      eye3, eye3, eye3, eye3, w1r).reshape(729, 648)
    b1bd = jnp.tile(b1.astype(f32), 81).reshape(1, 648)

    # conv2: input col = (s2, j=(kh,kw), c1), output col = (s2, c2)
    w2r = w2.transpose(2, 3, 1, 0).reshape(9, 8, 16).astype(f32)   # (j, c1, c2)
    w2bd = jnp.einsum("sS,jkc->sjkSc", eye9, w2r).reshape(648, 144)
    b2bd = jnp.tile(b2.astype(f32), 9).reshape(1, 144)

    # fc: our h2 col (s2, c2) -> PyTorch flatten index c2*9 + s2
    wfm = wf.reshape(3, 16, 9).transpose(2, 1, 0).reshape(144, 3).astype(f32)
    bfm = bf.reshape(1, 3).astype(f32)

    return {"w1bd": w1bd, "b1bd": b1bd, "w2bd": w2bd, "b2bd": b2bd,
            "wfm": wfm, "bfm": bfm}


# ----------------------------------------------------------------------------
# Jitted forward: free reshape + single pallas_call with a batch grid.
# ----------------------------------------------------------------------------
@jax.jit
def tiny_conv_apply(x, prep):
    B = x.shape[0]
    assert x.shape[1:] == (1, 27, 27), x.shape
    x_flat = x.reshape(B, 729).astype(jnp.float32)   # contiguous -> no copy

    block_b = _pick_block_b(B)
    b_pad = ((B + block_b - 1) // block_b) * block_b
    if b_pad != B:
        x_flat = jnp.pad(x_flat, ((0, b_pad - B), (0, 0)))

    out = pl.pallas_call(
        _fused_kernel,
        out_shape=jax.ShapeDtypeStruct((b_pad, 3), jnp.float32),
        grid=(b_pad // block_b,),
        in_specs=[
            pl.BlockSpec((block_b, 729), lambda i: (i, 0)),
            pl.BlockSpec((729, 648), lambda i: (0, 0)),
            pl.BlockSpec((1, 648), lambda i: (0, 0)),
            pl.BlockSpec((648, 144), lambda i: (0, 0)),
            pl.BlockSpec((1, 144), lambda i: (0, 0)),
            pl.BlockSpec((144, 3), lambda i: (0, 0)),
            pl.BlockSpec((1, 3), lambda i: (0, 0)),
        ],
        out_specs=pl.BlockSpec((block_b, 3), lambda i: (i, 0)),
        compiler_params=pltpu.CompilerParams(
            dimension_semantics=("parallel",),        # megacore split on v7x
            vmem_limit_bytes=32 * 1024 * 1024),       # fits v5e 16MiB default? no: set explicit
    )(x_flat, prep["w1bd"], prep["b1bd"], prep["w2bd"], prep["b2bd"],
      prep["wfm"], prep["bfm"])
    return out[:B]


def tiny_conv_forward(x, params):
    """Mirrors TinyConv.forward: returns {'out': (B, 3)}."""
    return {"out": tiny_conv_apply(x, prepare_params(params))}


# ----------------------------------------------------------------------------
# Pure-JAX reference (correctness check only)
# ----------------------------------------------------------------------------
def tiny_conv_reference(x, params):
    dn = lax.conv_dimension_numbers(x.shape, params["w1"].shape,
                                    ("NCHW", "OIHW", "NCHW"))
    h = lax.conv_general_dilated(x, params["w1"], (3, 3), "VALID",
                                 dimension_numbers=dn)
    h = jnp.maximum(h + params["b1"][None, :, None, None], 0.0)
    dn2 = lax.conv_dimension_numbers(h.shape, params["w2"].shape,
                                     ("NCHW", "OIHW", "NCHW"))
    h = lax.conv_general_dilated(h, params["w2"], (3, 3), "VALID",
                                 dimension_numbers=dn2)
    h = jnp.maximum(h + params["b2"][None, :, None, None], 0.0)
    flat = h.reshape(h.shape[0], -1)
    return flat @ params["wf"].T + params["bf"]


def init_params(key):
    ks = jax.random.split(key, 6)
    return {
        "w1": 0.3 * jax.random.normal(ks[0], (8, 1, 3, 3), jnp.float32),
        "b1": 0.1 * jax.random.normal(ks[1], (8,), jnp.float32),
        "w2": 0.1 * jax.random.normal(ks[2], (16, 8, 3, 3), jnp.float32),
        "b2": 0.1 * jax.random.normal(ks[3], (16,), jnp.float32),
        "wf": 0.1 * jax.random.normal(ks[4], (3, 144), jnp.float32),
        "bf": 0.1 * jax.random.normal(ks[5], (3,), jnp.float32),
    }


if __name__ == "__main__":
    key = jax.random.PRNGKey(0)
    k_x, k_p = jax.random.split(key)

    # fc expects 16*3*3 features -> spatial 27x27 input (27 -> 9 -> 3)
    x = jax.random.normal(k_x, (2, 1, 27, 27), jnp.float32)
    params = init_params(k_p)

    prep = prepare_params(params)          # one-time weight folding
    out = tiny_conv_apply(x, prep)         # single jitted call, 1 pallas_call
    out = jax.block_until_ready(out)
    assert out.shape == (2, 3), out.shape

    ref = tiny_conv_reference(x, params)
    assert jnp.allclose(out, ref, atol=1e-3, rtol=1e-3), (out, ref)

    print("KERNEL_OK")
</pallas_src>

<mosaic_0001>
module attributes {stable_mosaic.version = 11 : i64} {
  func.func @_fused_kernel(%arg0: i32, %arg1: memref<8x729xf32, #tpu.memory_space<vmem>>, %arg2: memref<729x648xf32, #tpu.memory_space<vmem>>, %arg3: memref<1x648xf32, #tpu.memory_space<vmem>>, %arg4: memref<648x144xf32, #tpu.memory_space<vmem>>, %arg5: memref<1x144xf32, #tpu.memory_space<vmem>>, %arg6: memref<144x3xf32, #tpu.memory_space<vmem>>, %arg7: memref<1x3xf32, #tpu.memory_space<vmem>>, %arg8: memref<8x3xf32, #tpu.memory_space<vmem>>) attributes {dimension_semantics = [#tpu.dimension_semantics<parallel>], iteration_bounds = array<i64: 1>, scalar_prefetch = 0 : i64, scratch_operands = 0 : i64, tpu.core_type = #tpu.core_type<tc>, window_params = [{transform_indices = @transform_0, window_bounds = array<i64: 8, 729>}, {pipeline_mode = #tpu.pipeline_mode<synchronous>, transform_indices = @transform_1, window_bounds = array<i64: 729, 648>}, {pipeline_mode = #tpu.pipeline_mode<synchronous>, transform_indices = @transform_2, window_bounds = array<i64: 1, 648>}, {pipeline_mode = #tpu.pipeline_mode<synchronous>, transform_indices = @transform_3, window_bounds = array<i64: 648, 144>}, {pipeline_mode = #tpu.pipeline_mode<synchronous>, transform_indices = @transform_4, window_bounds = array<i64: 1, 144>}, {pipeline_mode = #tpu.pipeline_mode<synchronous>, transform_indices = @transform_5, window_bounds = array<i64: 144, 3>}, {pipeline_mode = #tpu.pipeline_mode<synchronous>, transform_indices = @transform_6, window_bounds = array<i64: 1, 3>}, {transform_indices = @transform_7, window_bounds = array<i64: 8, 3>}]} {
    %c0 = arith.constant 0 : index
    %c0_0 = arith.constant 0 : index
    %0 = vector.load %arg1[%c0, %c0_0] : memref<8x729xf32, #tpu.memory_space<vmem>>, vector<8x729xf32>
    %c0_1 = arith.constant 0 : index
    %c0_2 = arith.constant 0 : index
    %1 = vector.load %arg2[%c0_1, %c0_2] : memref<729x648xf32, #tpu.memory_space<vmem>>, vector<729x648xf32>
    %cst = arith.constant dense<0.000000e+00> : vector<8x648xf32>
    %2 = tpu.matmul %0, %1, %cst {dimension_numbers = #tpu.dot_dimension_numbers<[1], [0], [0], [1], [0, 0, 1, 1], [], []>} : vector<8x729xf32>, vector<729x648xf32>, vector<8x648xf32> -> vector<8x648xf32>
    %c0_3 = arith.constant 0 : index
    %c0_4 = arith.constant 0 : index
    %3 = vector.load %arg3[%c0_3, %c0_4] : memref<1x648xf32, #tpu.memory_space<vmem>>, vector<1x648xf32>
    %4 = vector.broadcast %3 : vector<1x648xf32> to vector<8x648xf32>
    %5 = arith.addf %2, %4 : vector<8x648xf32>
    %cst_5 = arith.constant 0.000000e+00 : f32
    %6 = vector.broadcast %cst_5 : f32 to vector<8x648xf32>
    %7 = arith.maximumf %5, %6 : vector<8x648xf32>
    %c0_6 = arith.constant 0 : index
    %c0_7 = arith.constant 0 : index
    %8 = vector.load %arg4[%c0_6, %c0_7] : memref<648x144xf32, #tpu.memory_space<vmem>>, vector<648x144xf32>
    %cst_8 = arith.constant dense<0.000000e+00> : vector<8x144xf32>
    %9 = tpu.matmul %7, %8, %cst_8 {dimension_numbers = #tpu.dot_dimension_numbers<[1], [0], [0], [1], [0, 0, 1, 1], [], []>} : vector<8x648xf32>, vector<648x144xf32>, vector<8x144xf32> -> vector<8x144xf32>
    %c0_9 = arith.constant 0 : index
    %c0_10 = arith.constant 0 : index
    %10 = vector.load %arg5[%c0_9, %c0_10] : memref<1x144xf32, #tpu.memory_space<vmem>>, vector<1x144xf32>
    %11 = vector.broadcast %10 : vector<1x144xf32> to vector<8x144xf32>
    %12 = arith.addf %9, %11 : vector<8x144xf32>
    %cst_11 = arith.constant 0.000000e+00 : f32
    %13 = vector.broadcast %cst_11 : f32 to vector<8x144xf32>
    %14 = arith.maximumf %12, %13 : vector<8x144xf32>
    %c0_12 = arith.constant 0 : index
    %c0_13 = arith.constant 0 : index
    %15 = vector.load %arg6[%c0_12, %c0_13] : memref<144x3xf32, #tpu.memory_space<vmem>>, vector<144x3xf32>
    %cst_14 = arith.constant dense<0.000000e+00> : vector<8x3xf32>
    %16 = tpu.matmul %14, %15, %cst_14 {dimension_numbers = #tpu.dot_dimension_numbers<[1], [0], [0], [1], [0, 0, 1, 1], [], []>} : vector<8x144xf32>, vector<144x3xf32>, vector<8x3xf32> -> vector<8x3xf32>
    %c0_15 = arith.constant 0 : index
    %c0_16 = arith.constant 0 : index
    %17 = vector.load %arg7[%c0_15, %c0_16] : memref<1x3xf32, #tpu.memory_space<vmem>>, vector<1x3xf32>
    %18 = vector.broadcast %17 : vector<1x3xf32> to vector<8x3xf32>
    %19 = arith.addf %16, %18 : vector<8x3xf32>
    %c0_17 = arith.constant 0 : index
    %c0_18 = arith.constant 0 : index
    %20 = vector.load %arg8[%c0_17, %c0_18] : memref<8x3xf32, #tpu.memory_space<vmem>>, vector<8x3xf32>
    tpu.vector_store %arg8[%c0_17, %c0_18], %19 {strides = array<i32>} : memref<8x3xf32, #tpu.memory_space<vmem>>, vector<8x3xf32>,
    return
  }
  func.func @transform_0(%arg0: i32) -> (i32, i32) {
    %c0_i32 = arith.constant 0 : i32
    %c0_i32_0 = arith.constant 0 : i32
    return %arg0, %c0_i32 : i32, i32
  }
  func.func @transform_1(%arg0: i32) -> (i32, i32) {
    %c0_i32 = arith.constant 0 : i32
    %c0_i32_0 = arith.constant 0 : i32
    %c0_i32_1 = arith.constant 0 : i32
    return %c0_i32, %c0_i32_0 : i32, i32
  }
  func.func @transform_2(%arg0: i32) -> (i32, i32) {
    %c0_i32 = arith.constant 0 : i32
    %c0_i32_0 = arith.constant 0 : i32
    %c0_i32_1 = arith.constant 0 : i32
    return %c0_i32, %c0_i32_0 : i32, i32
  }
  func.func @transform_3(%arg0: i32) -> (i32, i32) {
    %c0_i32 = arith.constant 0 : i32
    %c0_i32_0 = arith.constant 0 : i32
    %c0_i32_1 = arith.constant 0 : i32
    return %c0_i32, %c0_i32_0 : i32, i32
  }
  func.func @transform_4(%arg0: i32) -> (i32, i32) {
    %c0_i32 = arith.constant 0 : i32
    %c0_i32_0 = arith.constant 0 : i32
    %c0_i32_1 = arith.constant 0 : i32
    return %c0_i32, %c0_i32_0 : i32, i32
  }
  func.func @transform_5(%arg0: i32) -> (i32, i32) {
    %c0_i32 = arith.constant 0 : i32
    %c0_i32_0 = arith.constant 0 : i32
    %c0_i32_1 = arith.constant 0 : i32
    return %c0_i32, %c0_i32_0 : i32, i32
  }
  func.func @transform_6(%arg0: i32) -> (i32, i32) {
    %c0_i32 = arith.constant 0 : i32
    %c0_i32_0 = arith.constant 0 : i32
    %c0_i32_1 = arith.constant 0 : i32
    return %c0_i32, %c0_i32_0 : i32, i32
  }
  func.func @transform_7(%arg0: i32) -> (i32, i32) {
    %c0_i32 = arith.constant 0 : i32
    %c0_i32_0 = arith.constant 0 : i32
    return %arg0, %c0_i32 : i32, i32
  }
}

</mosaic_0001>

<bundles_post_ra>
// kernel: tiny_conv_apply.1
= control target key start
LH: loop header
LB: loop body
LE: loop exit
PB: predicated region body
PF: predicated region fallthrough
CT: control target
= control target key end

     0   :  { %vm616_vm0 = vcmask 728064   ;;  %vm620_vm1 = vcmask 1040384   ;;  %vm2571_vm2 = vmmov 1   ;;  %vm1458_vm4 = vcmask 64512   ;;  %s4912_s1 = inlined_call_operand.vmem [shape: f32[729,648], index: 1, kind: input, shape index: {}]   ;;  %s4913_s0 = inlined_call_operand.vmem [shape: f32[8,729], index: 0, kind: input, shape index: {}]   ;;  %s4914_s3 = inlined_call_operand.vmem [shape: f32[648,144], index: 3, kind: input, shape index: {}]   ;;  %s4915_s2 = inlined_call_operand.vmem [shape: f32[1,648], index: 2, kind: input, shape index: {}]   ;;  %s4916_s5 = inlined_call_operand.vmem [shape: f32[144,3], index: 5, kind: input, shape index: {}]   ;;  %s4917_s4 = inlined_call_operand.vmem [shape: f32[1,144], index: 4, kind: input, shape index: {}]   ;;  %s4918_s6 = inlined_call_operand.vmem [shape: f32[1,3], index: 6, kind: input, shape index: {}]   ;;  %s4919_s7 = inlined_call_operand.vmem [shape: f32[8,3], index: 7, kind: output, shape index: {}]  }
   0x1   :  { %v33_v0 = vld [vmem:[%s4912_s1 + $0x8] sm:$0xff]  ;;  %v39_v1 = vld [vmem:[%s4912_s1 + $0x38] sm:$0xff]  ;;  %v32_v2 = vld [vmem:[%s4912_s1] sm:$0xff]  ;;  %vm1702_vm5 = vcmask 130048   ;;  %vm1776_vm6 = vcmask 23552  }
   0x2   :  { %v1794_v3 = vpack.c.bf16 %v39_v1, %v33_v0  ;;  %v38_v4 = vld [vmem:[%s4912_s1 + $0x30] sm:$0xff]  ;;  %v45_v5 = vld [vmem:[%s4912_s1 + $0x68] sm:$0xff]  ;;  %v51_v6 = vld [vmem:[%s4912_s1 + $0x98] sm:$0xff] }
   0x3   :  { %v1796_v7 = vpack.c.bf16 %v38_v4, %v32_v2  ;;  %v1798_v8 = vpack.c.bf16 %v51_v6, %v45_v5  ;;  %v44_v9 = vld [vmem:[%s4912_s1 + $0x60] sm:$0xff]  ;;  %v50_v10 = vld [vmem:[%s4912_s1 + $0x90] sm:$0xff]  ;;  %v57_v11 = vld [vmem:[%s4912_s1 + $0xc8] sm:$0xff] }
   0x4   :  { %1795 = vmatprep.subr.bf16.mxu0 %v1794_v3  ;;  %v63_v12 = vld [vmem:[%s4912_s1 + $0xf8] sm:$0xff]  ;;  %v1800_v13 = vpack.c.bf16 %v50_v10, %v44_v9  ;;  %v56_v15 = vld [vmem:[%s4912_s1 + $0xc0] sm:$0xff]  ;;  %v62_v16 = vld [vmem:[%s4912_s1 + $0xf0] sm:$0xff] }
   0x5   :  { %1797 = vmatpush1.bf16.msra.mxu0 %v1796_v7  ;;  %v1802_v14 = vpack.c.bf16 %v63_v12, %v57_v11  ;;  %v69_v17 = vld [vmem:[%s4912_s1 + $0x128] sm:$0xff]  ;;  %v75_v18 = vld [vmem:[%s4912_s1 + $0x158] sm:$0xff]  ;;  %v1804_v19 = vpack.c.bf16 %v62_v16, %v56_v15  ;;  %v68_v21 = vld [vmem:[%s4912_s1 + $0x120] sm:$0xff] }
   0x6   :  { %1799 = vmatprep.subr.bf16.mxu0 %v1798_v8  ;;  %v1806_v20 = vpack.c.bf16 %v75_v18, %v69_v17  ;;  %v74_v22 = vld [vmem:[%s4912_s1 + $0x150] sm:$0xff]  ;;  %v81_v23 = vld [vmem:[%s4912_s1 + $0x188] sm:$0xff]  ;;  %v87_v24 = vld [vmem:[%s4912_s1 + $0x1b8] sm:$0xff] }
   0x7   :  { %v35_v25 = vld [vmem:[%s4912_s1 + $0x18] sm:$0xff]  ;;  %v41_v26 = vld [vmem:[%s4912_s1 + $0x48] sm:$0xff]  ;;  %v1808_v27 = vpack.c.bf16 %v74_v22, %v68_v21  ;;  %v80_v28 = vld [vmem:[%s4912_s1 + $0x180] sm:$0xff]  ;;  %v1810_v32 = vpack.c.bf16 %v87_v24, %v81_v23 }
   0x8   :  { %v1980_v29 = vpack.c.bf16 %v41_v26, %v35_v25  ;;  %v34_v30 = vld [vmem:[%s4912_s1 + $0x10] sm:$0xff]  ;;  %v40_v31 = vld [vmem:[%s4912_s1 + $0x40] sm:$0xff]  ;;  %v47_v35 = vld [vmem:[%s4912_s1 + $0x78] sm:$0xff] }
   0x9   :  { %1801 = vmatpush1.bf16.msra.mxu0 %v1800_v13  ;;  %v86_v33 = vld [vmem:[%s4912_s1 + $0x1b0] sm:$0xff]  ;;  %v1982_v34 = vpack.c.bf16 %v40_v31, %v34_v30  ;;  %v53_v36 = vld [vmem:[%s4912_s1 + $0xa8] sm:$0xff]  ;;  %v99_v38 = vld [vmem:[%s4912_s1 + $0x218] sm:$0xff] }
   0xa   :  { %1803 = vmatprep.subr.bf16.mxu0 %v1802_v14  ;;  %v93_v37 = vld [vmem:[%s4912_s1 + $0x1e8] sm:$0xff]  ;;  %1981 = vmatprep.subr.bf16.mxu1 %v1980_v29  ;;  %v1984_v39 = vpack.c.bf16 %v53_v36, %v47_v35  ;;  %v46_v40 = vld [vmem:[%s4912_s1 + $0x70] sm:$0xff]  ;;  %v52_v41 = vld [vmem:[%s4912_s1 + $0xa0] sm:$0xff]  ;;  %v1812_v42 = vpack.c.bf16 %v86_v33, %v80_v28 }
   0xb   :  { %1983 = vmatpush1.bf16.msra.mxu1 %v1982_v34  ;;  %v92_v43 = vld [vmem:[%s4912_s1 + $0x1e0] sm:$0xff]  ;;  %v1986_v44 = vpack.c.bf16 %v52_v41, %v46_v40  ;;  %v59_v45 = vld [vmem:[%s4912_s1 + $0xd8] sm:$0xff]  ;;  %v65_v46 = vld [vmem:[%s4912_s1 + $0x108] sm:$0xff]  ;;  %v1814_v47 = vpack.c.bf16 %v99_v38, %v93_v37 }
   0xc   :  { %1985 = vmatprep.subr.bf16.mxu1 %v1984_v39  ;;  %v98_v48 = vld [vmem:[%s4912_s1 + $0x210] sm:$0xff]  ;;  %v1988_v49 = vpack.c.bf16 %v65_v46, %v59_v45  ;;  %v64_v51 = vld [vmem:[%s4912_s1 + $0x100] sm:$0xff]  ;;  %v105_v52 = vld [vmem:[%s4912_s1 + $0x248] sm:$0xff] }
   0xd   :  { %1805 = vmatpush1.bf16.msra.mxu0 %v1804_v19  ;;  %v58_v50 = vld [vmem:[%s4912_s1 + $0xd0] sm:$0xff]  ;;  %v111_v53 = vld [vmem:[%s4912_s1 + $0x278] sm:$0xff]  ;;  %v77_v56 = vld [vmem:[%s4912_s1 + $0x168] sm:$0xff]  ;;  %v1816_v57 = vpack.c.bf16 %v98_v48, %v92_v43 }
   0xe   :  { %1807 = vmatprep.subr.bf16.mxu0 %v1806_v20  ;;  %v71_v54 = vld [vmem:[%s4912_s1 + $0x138] sm:$0xff]  ;;  %v1990_v55 = vpack.c.bf16 %v64_v51, %v58_v50  ;;  %v104_v58 = vld [vmem:[%s4912_s1 + $0x240] sm:$0xff]  ;;  %v70_v60 = vld [vmem:[%s4912_s1 + $0x130] sm:$0xff]  ;;  %v1818_v62 = vpack.c.bf16 %v111_v53, %v105_v52 }
   0xf   :  { %1987 = vmatpush1.bf16.msra.mxu1 %v1986_v44  ;;  %v1992_v59 = vpack.c.bf16 %v77_v56, %v71_v54  ;;  %v76_v61 = vld [vmem:[%s4912_s1 + $0x160] sm:$0xff]  ;;  %v110_v63 = vld [vmem:[%s4912_s1 + $0x270] sm:$0xff]  ;;  %v83_v0 = vld [vmem:[%s4912_s1 + $0x198] sm:$0xff] }
  0x10   :  { %1989 = vmatprep.subr.bf16.mxu1 %v1988_v49  ;;  %v89_v1 = vld [vmem:[%s4912_s1 + $0x1c8] sm:$0xff]  ;;  %v123_v3 = vld [vmem:[%s4912_s1 + $0x2d8] sm:$0xff]  ;;  %v1994_v4 = vpack.c.bf16 %v76_v61, %v70_v60  ;;  %v1820_v5 = vpack.c.bf16 %v110_v63, %v104_v58  ;;  %v116_v6 = vld [vmem:[%s4912_s1 + $0x2a0] sm:$0xff] }
  0x11   :  { %1809 = vmatpush1.bf16.msra.mxu0 %v1808_v27  ;;  %v117_v2 = vld [vmem:[%s4912_s1 + $0x2a8] sm:$0xff]  ;;  %v1996_v7 = vpack.c.bf16 %v89_v1, %v83_v0  ;;  %v82_v8 = vld [vmem:[%s4912_s1 + $0x190] sm:$0xff]  ;;  %v88_v9 = vld [vmem:[%s4912_s1 + $0x1c0] sm:$0xff] }
  0x12   :  { %1811 = vmatprep.subr.bf16.mxu0 %v1810_v32  ;;  %v1822_v10 = vpack.c.bf16 %v123_v3, %v117_v2  ;;  %v122_v11 = vld [vmem:[%s4912_s1 + $0x2d0] sm:$0xff]  ;;  %v95_v12 = vld [vmem:[%s4912_s1 + $0x1f8] sm:$0xff]  ;;  %v101_v13 = vld [vmem:[%s4912_s1 + $0x228] sm:$0xff]  ;;  %v1998_v16 = vpack.c.bf16 %v88_v9, %v82_v8 }
  0x13   :  { %1991 = vmatpush1.bf16.msra.mxu1 %v1990_v55  ;;  %v129_v14 = vld [vmem:[%s4912_s1 + $0x308] sm:$0xff]  ;;  %v135_v15 = vld [vmem:[%s4912_s1 + $0x338] sm:$0xff]  ;;  %v1824_v17 = vpack.c.bf16 %v122_v11, %v116_v6  ;;  %v128_v18 = vld [vmem:[%s4912_s1 + $0x300] sm:$0xff]  ;;  %v2000_v19 = vpack.c.bf16 %v101_v13, %v95_v12 }
  0x14   :  { %1993 = vmatprep.subr.bf16.mxu1 %v1992_v59  ;;  %v94_v20 = vld [vmem:[%s4912_s1 + $0x1f0] sm:$0xff]  ;;  %v100_v21 = vld [vmem:[%s4912_s1 + $0x220] sm:$0xff]  ;;  %v1826_v22 = vpack.c.bf16 %v135_v15, %v129_v14  ;;  %v107_v24 = vld [vmem:[%s4912_s1 + $0x258] sm:$0xff] }
  0x15   :  { %1813 = vmatpush1.bf16.msra.mxu0 %v1812_v42  ;;  %v134_v23 = vld [vmem:[%s4912_s1 + $0x330] sm:$0xff]  ;;  %v113_v25 = vld [vmem:[%s4912_s1 + $0x288] sm:$0xff]  ;;  %v147_v27 = vld [vmem:[%s4912_s1 + $0x398] sm:$0xff]  ;;  %v2002_v29 = vpack.c.bf16 %v100_v21, %v94_v20 }
  0x16   :  { %1815 = vmatprep.subr.bf16.mxu0 %v1814_v47  ;;  %v141_v26 = vld [vmem:[%s4912_s1 + $0x368] sm:$0xff]  ;;  %v140_v28 = vld [vmem:[%s4912_s1 + $0x360] sm:$0xff]  ;;  %v1828_v30 = vpack.c.bf16 %v134_v23, %v128_v18  ;;  %v2004_v31 = vpack.c.bf16 %v113_v25, %v107_v24  ;;  %v106_v32 = vld [vmem:[%s4912_s1 + $0x250] sm:$0xff] }
  0x17   :  { %1995 = vmatpush1.bf16.msra.mxu1 %v1994_v4  ;;  %v112_v33 = vld [vmem:[%s4912_s1 + $0x280] sm:$0xff]  ;;  %v27_v34 = vld [vmem:[%s4913_s0 + $0x8] sm:$0xff]  ;;  %v1830_v35 = vpack.c.bf16 %v147_v27, %v141_v26  ;;  %v146_v36 = vld [vmem:[%s4912_s1 + $0x390] sm:$0xff] }
  0x18   :  { %1997 = vmatprep.subr.bf16.mxu1 %v1996_v7  ;;  %v119_v37 = vld [vmem:[%s4912_s1 + $0x2b8] sm:$0xff]  ;;  %v125_v38 = vld [vmem:[%s4912_s1 + $0x2e8] sm:$0xff]  ;;  %703 = vmatprep.mubr.f32.mxu0 %v27_v34  ;;  %v2006_v41 = vpack.c.bf16 %v112_v33, %v106_v32  ;;  %v1832_v42 = vpack.c.bf16 %v146_v36, %v140_v28  ;;  %v152_v43 = vld [vmem:[%s4912_s1 + $0x3c0] sm:$0xff] }
  0x19   :  { %1817 = vmatpush1.bf16.msra.mxu0 %v1816_v57  ;;  %v153_v39 = vld [vmem:[%s4912_s1 + $0x3c8] sm:$0xff]  ;;  %v159_v40 = vld [vmem:[%s4912_s1 + $0x3f8] sm:$0xff]  ;;  %916 = vmatprep.mubr.f32.mxu1 %v27_v34  ;;  %v2008_v44 = vpack.c.bf16 %v125_v38, %v119_v37  ;;  %v118_v45 = vld [vmem:[%s4912_s1 + $0x2b0] sm:$0xff] }
  0x1a   :  { %1819 = vmatprep.subr.bf16.mxu0 %v1818_v62  ;;  %v124_v46 = vld [vmem:[%s4912_s1 + $0x2e0] sm:$0xff]  ;;  %v1834_v47 = vpack.c.bf16 %v159_v40, %v153_v39  ;;  %v158_v48 = vld [vmem:[%s4912_s1 + $0x3f0] sm:$0xff]  ;;  %v131_v49 = vld [vmem:[%s4912_s1 + $0x318] sm:$0xff] }
  0x1b   :  { %1999 = vmatpush1.bf16.msra.mxu1 %v1998_v16  ;;  %v137_v50 = vld [vmem:[%s4912_s1 + $0x348] sm:$0xff]  ;;  %v171_v52 = vld [vmem:[%s4912_s1 + $0x458] sm:$0xff]  ;;  %v2010_v53 = vpack.c.bf16 %v124_v46, %v118_v45  ;;  %v1836_v54 = vpack.c.bf16 %v158_v48, %v152_v43  ;;  %v164_v55 = vld [vmem:[%s4912_s1 + $0x420] sm:$0xff] }
  0x1c   :  { %2001 = vmatprep.subr.bf16.mxu1 %v2000_v19  ;;  %v165_v51 = vld [vmem:[%s4912_s1 + $0x428] sm:$0xff]  ;;  %v2012_v56 = vpack.c.bf16 %v137_v50, %v131_v49  ;;  %v130_v57 = vld [vmem:[%s4912_s1 + $0x310] sm:$0xff]  ;;  %v136_v58 = vld [vmem:[%s4912_s1 + $0x340] sm:$0xff] }
  0x1d   :  { %1821 = vmatpush1.bf16.msra.mxu0 %v1820_v5  ;;  %v1838_v59 = vpack.c.bf16 %v171_v52, %v165_v51  ;;  %v170_v60 = vld [vmem:[%s4912_s1 + $0x450] sm:$0xff]  ;;  %v143_v61 = vld [vmem:[%s4912_s1 + $0x378] sm:$0xff]  ;;  %v149_v62 = vld [vmem:[%s4912_s1 + $0x3a8] sm:$0xff]  ;;  %v2014_v1 = vpack.c.bf16 %v136_v58, %v130_v57 }
  0x1e   :  { %1823 = vmatprep.subr.bf16.mxu0 %v1822_v10  ;;  %v177_v63 = vld [vmem:[%s4912_s1 + $0x488] sm:$0xff]  ;;  %v183_v0 = vld [vmem:[%s4912_s1 + $0x4b8] sm:$0xff]  ;;  %v1840_v2 = vpack.c.bf16 %v170_v60, %v164_v55  ;;  %v176_v3 = vld [vmem:[%s4912_s1 + $0x480] sm:$0xff]  ;;  %v2016_v4 = vpack.c.bf16 %v149_v62, %v143_v61 }
  0x1f   :  { %2003 = vmatpush1.bf16.msra.mxu1 %v2002_v29  ;;  %v142_v5 = vld [vmem:[%s4912_s1 + $0x370] sm:$0xff]  ;;  %v148_v6 = vld [vmem:[%s4912_s1 + $0x3a0] sm:$0xff]  ;;  %v1842_v7 = vpack.c.bf16 %v183_v0, %v177_v63  ;;  %v155_v9 = vld [vmem:[%s4912_s1 + $0x3d8] sm:$0xff] }
  0x20   :  { %2005 = vmatprep.subr.bf16.mxu1 %v2004_v31  ;;  %v182_v8 = vld [vmem:[%s4912_s1 + $0x4b0] sm:$0xff]  ;;  %v161_v10 = vld [vmem:[%s4912_s1 + $0x408] sm:$0xff]  ;;  %v195_v12 = vld [vmem:[%s4912_s1 + $0x518] sm:$0xff]  ;;  %v2018_v13 = vpack.c.bf16 %v148_v6, %v142_v5 }
  0x21   :  { %1825 = vmatpush1.bf16.msra.mxu0 %v1824_v17  ;;  %v189_v11 = vld [vmem:[%s4912_s1 + $0x4e8] sm:$0xff]  ;;  %v1844_v14 = vpack.c.bf16 %v182_v8, %v176_v3  ;;  %v188_v15 = vld [vmem:[%s4912_s1 + $0x4e0] sm:$0xff]  ;;  %v2020_v16 = vpack.c.bf16 %v161_v10, %v155_v9  ;;  %v154_v17 = vld [vmem:[%s4912_s1 + $0x3d0] sm:$0xff] }
  0x22   :  { %1827 = vmatprep.subr.bf16.mxu0 %v1826_v22  ;;  %v160_v18 = vld [vmem:[%s4912_s1 + $0x400] sm:$0xff]  ;;  %v1846_v19 = vpack.c.bf16 %v195_v12, %v189_v11  ;;  %v194_v20 = vld [vmem:[%s4912_s1 + $0x510] sm:$0xff]  ;;  %v167_v21 = vld [vmem:[%s4912_s1 + $0x438] sm:$0xff] }
  0x23   :  { %2007 = vmatpush1.bf16.msra.mxu1 %v2006_v41  ;;  %v173_v22 = vld [vmem:[%s4912_s1 + $0x468] sm:$0xff]  ;;  %v207_v24 = vld [vmem:[%s4912_s1 + $0x578] sm:$0xff]  ;;  %v2022_v25 = vpack.c.bf16 %v160_v18, %v154_v17  ;;  %v1848_v26 = vpack.c.bf16 %v194_v20, %v188_v15  ;;  %v200_v27 = vld [vmem:[%s4912_s1 + $0x540] sm:$0xff] }
  0x24   :  { %2009 = vmatprep.subr.bf16.mxu1 %v2008_v44  ;;  %v201_v23 = vld [vmem:[%s4912_s1 + $0x548] sm:$0xff]  ;;  %v2024_v28 = vpack.c.bf16 %v173_v22, %v167_v21  ;;  %v166_v29 = vld [vmem:[%s4912_s1 + $0x430] sm:$0xff]  ;;  %v179_v33 = vld [vmem:[%s4912_s1 + $0x498] sm:$0xff] }
  0x25   :  { %1829 = vmatpush1.bf16.msra.mxu0 %v1828_v30  ;;  %v172_v30 = vld [vmem:[%s4912_s1 + $0x460] sm:$0xff]  ;;  %v1850_v31 = vpack.c.bf16 %v207_v24, %v201_v23  ;;  %v206_v32 = vld [vmem:[%s4912_s1 + $0x570] sm:$0xff]  ;;  %v185_v34 = vld [vmem:[%s4912_s1 + $0x4c8] sm:$0xff] }
  0x26   :  { %1831 = vmatprep.subr.bf16.mxu0 %v1830_v35  ;;  %v213_v35 = vld [vmem:[%s4912_s1 + $0x5a8] sm:$0xff]  ;;  %v219_v36 = vld [vmem:[%s4912_s1 + $0x5d8] sm:$0xff]  ;;  %v2026_v37 = vpack.c.bf16 %v172_v30, %v166_v29  ;;  %v1852_v38 = vpack.c.bf16 %v206_v32, %v200_v27  ;;  %v212_v39 = vld [vmem:[%s4912_s1 + $0x5a0] sm:$0xff]  ;;  %v2028_v40 = vpack.c.bf16 %v185_v34, %v179_v33 }
  0x27   :  { %2011 = vmatpush1.bf16.msra.mxu1 %v2010_v53  ;;  %v178_v41 = vld [vmem:[%s4912_s1 + $0x490] sm:$0xff]  ;;  %v1854_v43 = vpack.c.bf16 %v219_v36, %v213_v35  ;;  %v191_v45 = vld [vmem:[%s4912_s1 + $0x4f8] sm:$0xff]  ;;  %v197_v46 = vld [vmem:[%s4912_s1 + $0x528] sm:$0xff] }
  0x28   :  { %2013 = vmatprep.subr.bf16.mxu1 %v2012_v56  ;;  %v218_v44 = vld [vmem:[%s4912_s1 + $0x5d0] sm:$0xff]  ;;  %v231_v48 = vld [vmem:[%s4912_s1 + $0x638] sm:$0xff]  ;;  %v224_v51 = vld [vmem:[%s4912_s1 + $0x600] sm:$0xff]  ;;  %v2032_v52 = vpack.c.bf16 %v197_v46, %v191_v45 }
  0x29   :  { %1833 = vmatpush1.bf16.msra.mxu0 %v1832_v42  ;;  %v184_v42 = vld [vmem:[%s4912_s1 + $0x4c0] sm:$0xff]  ;;  %v1856_v50 = vpack.c.bf16 %v218_v44, %v212_v39  ;;  %v190_v53 = vld [vmem:[%s4912_s1 + $0x4f0] sm:$0xff]  ;;  %v203_v57 = vld [vmem:[%s4912_s1 + $0x558] sm:$0xff] }
  0x2a   :  { %1835 = vmatprep.subr.bf16.mxu0 %v1834_v47  ;;  %v225_v47 = vld [vmem:[%s4912_s1 + $0x608] sm:$0xff]  ;;  %v2030_v49 = vpack.c.bf16 %v184_v42, %v178_v41  ;;  %v230_v56 = vld [vmem:[%s4912_s1 + $0x630] sm:$0xff]  ;;  %v243_v60 = vld [vmem:[%s4912_s1 + $0x698] sm:$0xff] }
  0x2b   :  { %2015 = vmatpush1.bf16.msra.mxu1 %v2014_v1  ;;  %v1858_v55 = vpack.c.bf16 %v231_v48, %v225_v47  ;;  %v209_v58 = vld [vmem:[%s4912_s1 + $0x588] sm:$0xff]  ;;  %v3003_v61 = vld [vmem:[%s4913_s0] sm:$0xff]  ;;  %v1860_v63 = vpack.c.bf16 %v230_v56, %v224_v51  ;;  %v242_v5 = vld [vmem:[%s4912_s1 + $0x690] sm:$0xff] }
  0x2c   :  { %2017 = vmatprep.subr.bf16.mxu1 %v2016_v4  ;;  %v236_v0 = vld [vmem:[%s4912_s1 + $0x660] sm:$0xff]  ;;  %v2036_v1 = vpack.c.bf16 %v209_v58, %v203_v57  ;;  %v215_v6 = vld [vmem:[%s4912_s1 + $0x5b8] sm:$0xff]  ;;  %v249_v8 = vld [vmem:[%s4912_s1 + $0x6c8] sm:$0xff] }
  0x2d   :  { %1837 = vmatpush1.bf16.msra.mxu0 %v1836_v54  ;;  %v196_v54 = vld [vmem:[%s4912_s1 + $0x520] sm:$0xff]  ;;  %v255_v9 = vld [vmem:[%s4912_s1 + $0x6f8] sm:$0xff]  ;;  %v1864_v11 = vpack.c.bf16 %v242_v5, %v236_v0  ;;  %v254_v17 = vld [vmem:[%s4912_s1 + $0x6f0] sm:$0xff] }
  0x2e   :  { %1839 = vmatprep.subr.bf16.mxu0 %v1838_v59  ;;  %v237_v59 = vld [vmem:[%s4912_s1 + $0x668] sm:$0xff]  ;;  %v2034_v62 = vpack.c.bf16 %v196_v54, %v190_v53  ;;  %v208_v3 = vld [vmem:[%s4912_s1 + $0x580] sm:$0xff]  ;;  %v227_v18 = vld [vmem:[%s4912_s1 + $0x618] sm:$0xff] }
  0x2f   :  { %2019 = vmatpush1.bf16.msra.mxu1 %v2018_v13  ;;  %v1862_v4 = vpack.c.bf16 %v243_v60, %v237_v59  ;;  %v248_v12 = vld [vmem:[%s4912_s1 + $0x6c0] sm:$0xff]  ;;  %v261_v20 = vld [vmem:[%s4912_s1 + $0x728] sm:$0xff]  ;;  %v267_v21 = vld [vmem:[%s4912_s1 + $0x758] sm:$0xff] }
  0x30   :  { %2021 = vmatprep.subr.bf16.mxu1 %v2020_v16  ;;  %v220_v15 = vld [vmem:[%s4912_s1 + $0x5e0] sm:$0xff]  ;;  %v1866_v16 = vpack.c.bf16 %v255_v9, %v249_v8  ;;  %v1868_v23 = vpack.c.bf16 %v254_v17, %v248_v12  ;;  %v266_v29 = vld [vmem:[%s4912_s1 + $0x750] sm:$0xff]  ;;  %v239_v30 = vld [vmem:[%s4912_s1 + $0x678] sm:$0xff] }
  0x31   :  { %1841 = vmatpush1.bf16.msra.mxu0 %v1840_v2  ;;  %v202_v2 = vld [vmem:[%s4912_s1 + $0x550] sm:$0xff]  ;;  %v260_v24 = vld [vmem:[%s4912_s1 + $0x720] sm:$0xff]  ;;  %v273_v32 = vld [vmem:[%s4912_s1 + $0x788] sm:$0xff] }
  0x32   :  { %1843 = vmatprep.subr.bf16.mxu0 %v1842_v7  ;;  %v221_v7 = vld [vmem:[%s4912_s1 + $0x5e8] sm:$0xff]  ;;  %v2038_v10 = vpack.c.bf16 %v208_v3, %v202_v2  ;;  %v232_v27 = vld [vmem:[%s4912_s1 + $0x640] sm:$0xff]  ;;  %v279_v33 = vld [vmem:[%s4912_s1 + $0x7b8] sm:$0xff]  ;;  %v1872_v36 = vpack.c.bf16 %v266_v29, %v260_v24 }
  0x33   :  { %2023 = vmatpush1.bf16.msra.mxu1 %v2022_v25  ;;  %v2040_v13 = vpack.c.bf16 %v221_v7, %v215_v6  ;;  %v272_v34 = vld [vmem:[%s4912_s1 + $0x780] sm:$0xff]  ;;  %v1874_v41 = vpack.c.bf16 %v279_v33, %v273_v32  ;;  %v278_v42 = vld [vmem:[%s4912_s1 + $0x7b0] sm:$0xff]  ;;  %v257_v44 = vld [vmem:[%s4912_s1 + $0x708] sm:$0xff] }
  0x34   :  { %2025 = vmatprep.subr.bf16.mxu1 %v2024_v28  ;;  %v1870_v28 = vpack.c.bf16 %v267_v21, %v261_v20  ;;  %v244_v39 = vld [vmem:[%s4912_s1 + $0x6a0] sm:$0xff]  ;;  %v285_v45 = vld [vmem:[%s4912_s1 + $0x7e8] sm:$0xff]  ;;  %v291_v46 = vld [vmem:[%s4912_s1 + $0x818] sm:$0xff]  ;;  %v1876_v48 = vpack.c.bf16 %v278_v42, %v272_v34 }
  0x35   :  { %1845 = vmatpush1.bf16.msra.mxu0 %v1844_v14  ;;  %v214_v14 = vld [vmem:[%s4912_s1 + $0x5b0] sm:$0xff]  ;;  %v1878_v53 = vpack.c.bf16 %v291_v46, %v285_v45  ;;  %v269_v56 = vld [vmem:[%s4912_s1 + $0x768] sm:$0xff]  ;;  %v303_v58 = vld [vmem:[%s4912_s1 + $0x878] sm:$0xff] }
  0x36   :  { %1847 = vmatprep.subr.bf16.mxu0 %v1846_v19  ;;  %v233_v19 = vld [vmem:[%s4912_s1 + $0x648] sm:$0xff]  ;;  %v2042_v22 = vpack.c.bf16 %v220_v15, %v214_v14  ;;  %v250_v51 = vld [vmem:[%s4912_s1 + $0x6d0] sm:$0xff]  ;;  %v268_v0 = vld [vmem:[%s4912_s1 + $0x760] sm:$0xff] }
  0x37   :  { %2027 = vmatpush1.bf16.msra.mxu1 %v2026_v37  ;;  %v2044_v25 = vpack.c.bf16 %v233_v19, %v227_v18  ;;  %v290_v54 = vld [vmem:[%s4912_s1 + $0x810] sm:$0xff]  ;;  %v297_v57 = vld [vmem:[%s4912_s1 + $0x848] sm:$0xff]  ;;  %v275_v3 = vld [vmem:[%s4912_s1 + $0x798] sm:$0xff] }
  0x38   :  { %2029 = vmatprep.subr.bf16.mxu1 %v2028_v40  ;;  %v29_v40 = vld [vmem:[%s4913_s0 + $0x18] sm:$0xff]  ;;  %v302_v2 = vld [vmem:[%s4912_s1 + $0x870] sm:$0xff]  ;;  %v309_v5 = vld [vmem:[%s4912_s1 + $0x8a8] sm:$0xff] }
  0x39   :  { %1849 = vmatpush1.bf16.msra.mxu0 %v1848_v26  ;;  %v226_v26 = vld [vmem:[%s4912_s1 + $0x610] sm:$0xff]  ;;  %v315_v6 = vld [vmem:[%s4912_s1 + $0x8d8] sm:$0xff]  ;;  %v308_v9 = vld [vmem:[%s4912_s1 + $0x8a0] sm:$0xff] }
  0x3a   :  { %1851 = vmatprep.subr.bf16.mxu0 %v1850_v31  ;;  %v245_v31 = vld [vmem:[%s4912_s1 + $0x6a8] sm:$0xff]  ;;  %v2046_v35 = vpack.c.bf16 %v232_v27, %v226_v26  ;;  %v280_v12 = vld [vmem:[%s4912_s1 + $0x7c0] sm:$0xff]  ;;  %v314_v14 = vld [vmem:[%s4912_s1 + $0x8d0] sm:$0xff] }
  0x3b   :  { %2031 = vmatpush1.bf16.msra.mxu1 %v2030_v49  ;;  %v2048_v37 = vpack.c.bf16 %v245_v31, %v239_v30  ;;  %v284_v49 = vld [vmem:[%s4912_s1 + $0x7e0] sm:$0xff]  ;;  %v287_v15 = vld [vmem:[%s4912_s1 + $0x7f8] sm:$0xff]  ;;  %v321_v17 = vld [vmem:[%s4912_s1 + $0x908] sm:$0xff]  ;;  %v1888_v20 = vpack.c.bf16 %v314_v14, %v308_v9 }
  0x3c   :  { %2033 = vmatprep.subr.bf16.mxu1 %v2032_v52  ;;  %v256_v52 = vld [vmem:[%s4912_s1 + $0x700] sm:$0xff]  ;;  %v1880_v60 = vpack.c.bf16 %v290_v54, %v284_v49  ;;  %v327_v18 = vld [vmem:[%s4912_s1 + $0x938] sm:$0xff]  ;;  %v326_v26 = vld [vmem:[%s4912_s1 + $0x930] sm:$0xff] }
  0x3d   :  { %1853 = vmatpush1.bf16.msra.mxu0 %v1852_v38  ;;  %v238_v38 = vld [vmem:[%s4912_s1 + $0x670] sm:$0xff]  ;;  %v2054_v59 = vpack.c.bf16 %v256_v52, %v250_v51  ;;  %v320_v21 = vld [vmem:[%s4912_s1 + $0x900] sm:$0xff]  ;;  %v299_v27 = vld [vmem:[%s4912_s1 + $0x858] sm:$0xff] }
  0x3e   :  { %1855 = vmatprep.subr.bf16.mxu0 %v1854_v43  ;;  %v251_v43 = vld [vmem:[%s4912_s1 + $0x6d8] sm:$0xff]  ;;  %v2050_v47 = vpack.c.bf16 %v244_v39, %v238_v38  ;;  %v292_v24 = vld [vmem:[%s4912_s1 + $0x820] sm:$0xff]  ;;  %v333_v29 = vld [vmem:[%s4912_s1 + $0x968] sm:$0xff]  ;;  %v1892_v32 = vpack.c.bf16 %v326_v26, %v320_v21 }
  0x3f   :  { %2035 = vmatpush1.bf16.msra.mxu1 %v2034_v62  ;;  %v339_v30 = vld [vmem:[%s4912_s1 + $0x998] sm:$0xff]  ;;  %v332_v33 = vld [vmem:[%s4912_s1 + $0x960] sm:$0xff]  ;;  %v338_v38 = vld [vmem:[%s4912_s1 + $0x990] sm:$0xff] }
  0x40   :  { %2037 = vmatprep.subr.bf16.mxu1 %v2036_v1  ;;  %v1882_v1 = vpack.c.bf16 %v303_v58, %v297_v57  ;;  %v311_v39 = vld [vmem:[%s4912_s1 + $0x8b8] sm:$0xff]  ;;  %v344_v45 = vld [vmem:[%s4912_s1 + $0x9c0] sm:$0xff]  ;;  %v329_v52 = vld [vmem:[%s4912_s1 + $0x948] sm:$0xff] }
  0x41   :  { %1857 = vmatpush1.bf16.msra.mxu0 %v1856_v50  ;;  %v2052_v50 = vpack.c.bf16 %v257_v44, %v251_v43  ;;  %v351_v42 = vld [vmem:[%s4912_s1 + $0x9f8] sm:$0xff]  ;;  %v1896_v44 = vpack.c.bf16 %v338_v38, %v332_v33  ;;  %v356_v57 = vld [vmem:[%s4912_s1 + $0xa20] sm:$0xff]  ;;  %vm3713_vm3 = vmpackc.low %vm620_vm1, %vm2571_vm2 }
  0x42   :  { %1859 = vmatprep.subr.bf16.mxu0 %v1858_v55  ;;  %v263_v55 = vld [vmem:[%s4912_s1 + $0x738] sm:$0xff] }
  0x43   :  { %2039 = vmatpush1.bf16.msra.mxu1 %v2038_v10  ;;  %v2056_v62 = vpack.c.bf16 %v269_v56, %v263_v55  ;;  %v323_v51 = vld [vmem:[%s4912_s1 + $0x918] sm:$0xff] }
  0x44   :  { %704 = vmatmul.mubr.f32.vlgmr.msra.gmra.mrb[0].mxu0 %v3003_v61  ;;  %2041 = vmatprep.subr.bf16.mxu1 %v2040_v13  ;;  %v1886_v13 = vpack.c.bf16 %v315_v6, %v309_v5  ;;  %v363_v54 = vld [vmem:[%s4912_s1 + $0xa58] sm:$0xff]  ;;  %v2076_v58 = vpack.c.bf16 %v329_v52, %v323_v51  ;;  %v368_v5 = vld [vmem:[%s4912_s1 + $0xa80] sm:$0xff] }
  0x45   :  { %1861 = vmatpush1.bf16.msra.mxu0 %v1860_v63  ;;  %774 = vmatprep.mubr.f32.mxu0 %v29_v40  ;;  %v262_v63 = vld [vmem:[%s4912_s1 + $0x730] sm:$0xff]  ;;  %v387_v14 = vld [vmem:[%s4912_s1 + $0xb18] sm:$0xff] }
  0x46   :  { %1863 = vmatprep.subr.bf16.mxu0 %v1862_v4  ;;  %v281_v4 = vld [vmem:[%s4912_s1 + $0x7c8] sm:$0xff]  ;;  %v2058_v7 = vpack.c.bf16 %v268_v0, %v262_v63  ;;  %v335_v63 = vld [vmem:[%s4912_s1 + $0x978] sm:$0xff] }
  0x47   :  { %2043 = vmatpush1.bf16.msra.mxu1 %v2042_v22  ;;  %v2060_v10 = vpack.c.bf16 %v281_v4, %v275_v3  ;;  %v341_v0 = vld [vmem:[%s4912_s1 + $0x9a8] sm:$0xff]  ;;  %v399_v26 = vld [vmem:[%s4912_s1 + $0xb78] sm:$0xff] }
  0x48   :  { %2045 = vmatprep.subr.bf16.mxu1 %v2044_v25  ;;  %v1890_v25 = vpack.c.bf16 %v327_v18, %v321_v17  ;;  %v2080_v6 = vpack.c.bf16 %v341_v0, %v335_v63  ;;  %v380_v17 = vld [vmem:[%s4912_s1 + $0xae0] sm:$0xff]  ;;  %v411_v38 = vld [vmem:[%s4912_s1 + $0xbd8] sm:$0xff]  ;;  %v3397_v63 = vld [vmem:[%s4913_s0 + $0x10] sm:$0xff] }
  0x49   :  { %1865 = vmatpush1.bf16.msra.mxu0 %v1864_v11  ;;  %v274_v11 = vld [vmem:[%s4912_s1 + $0x790] sm:$0xff] }
  0x4a   :  { %1867 = vmatprep.subr.bf16.mxu0 %v1866_v16  ;;  %917 = vmatmul.mubr.f32.vlgmr.msra.gmra.mrb[0].mxu1 %v3003_v61  ;;  %v296_v61 = vld [vmem:[%s4912_s1 + $0x840] sm:$0xff]  ;;  %v293_v16 = vld [vmem:[%s4912_s1 + $0x828] sm:$0xff]  ;;  %v2062_v19 = vpack.c.bf16 %v280_v12, %v274_v11  ;;  %v347_v11 = vld [vmem:[%s4912_s1 + $0x9d8] sm:$0xff] }
  0x4b   :  { %2047 = vmatpush1.bf16.msra.mxu1 %v2046_v35  ;;  %987 = vmatprep.mubr.f32.mxu1 %v29_v40  ;;  %v1884_v8 = vpack.c.bf16 %v302_v2, %v296_v61  ;;  %v2064_v22 = vpack.c.bf16 %v293_v16, %v287_v15  ;;  %v298_v35 = vld [vmem:[%s4912_s1 + $0x850] sm:$0xff]  ;;  %v317_v40 = vld [vmem:[%s4912_s1 + $0x8e8] sm:$0xff]  ;;  %v375_v2 = vld [vmem:[%s4912_s1 + $0xab8] sm:$0xff] }
  0x4c   :  { %2049 = vmatprep.subr.bf16.mxu1 %v2048_v37  ;;  %v1894_v37 = vpack.c.bf16 %v339_v30, %v333_v29  ;;  %v2072_v46 = vpack.c.bf16 %v317_v40, %v311_v39  ;;  %v353_v12 = vld [vmem:[%s4912_s1 + $0xa08] sm:$0xff]  ;;  %v392_v29 = vld [vmem:[%s4912_s1 + $0xb40] sm:$0xff] }
  0x4d   :  { %1869 = vmatpush1.bf16.msra.mxu0 %v1868_v23  ;;  %v286_v23 = vld [vmem:[%s4912_s1 + $0x7f0] sm:$0xff]  ;;  %v2084_v18 = vpack.c.bf16 %v353_v12, %v347_v11  ;;  %v447_v11 = vld [vmem:[%s4912_s1 + $0xcf8] sm:$0xff]  ;;  %v31_v12 = vld [vmem:[%s4913_s0 + $0x28] sm:$0xff] }
  0x4e   :  { %1871 = vmatprep.subr.bf16.mxu0 %v1870_v28  ;;  %v305_v28 = vld [vmem:[%s4912_s1 + $0x888] sm:$0xff]  ;;  %v2066_v31 = vpack.c.bf16 %v292_v24, %v286_v23  ;;  %v359_v23 = vld [vmem:[%s4912_s1 + $0xa38] sm:$0xff] }
  0x4f   :  { %2051 = vmatpush1.bf16.msra.mxu1 %v2050_v47  ;;  %v2068_v34 = vpack.c.bf16 %v305_v28, %v299_v27  ;;  %v310_v47 = vld [vmem:[%s4912_s1 + $0x8b0] sm:$0xff]  ;;  %v365_v24 = vld [vmem:[%s4912_s1 + $0xa68] sm:$0xff] }
  0x50   :  { %2053 = vmatprep.subr.bf16.mxu1 %v2052_v50  ;;  %v350_v50 = vld [vmem:[%s4912_s1 + $0x9f0] sm:$0xff]  ;;  %v2088_v30 = vpack.c.bf16 %v365_v24, %v359_v23  ;;  %v453_v23 = vld [vmem:[%s4912_s1 + $0xd28] sm:$0xff]  ;;  %v459_v24 = vld [vmem:[%s4912_s1 + $0xd58] sm:$0xff] }
  0x51   :  { %1873 = vmatpush1.bf16.msra.mxu0 %v1872_v36  ;;  %v304_v36 = vld [vmem:[%s4912_s1 + $0x880] sm:$0xff]  ;;  %v1900_v56 = vpack.c.bf16 %v350_v50, %v344_v45  ;;  %v423_v50 = vld [vmem:[%s4912_s1 + $0xc38] sm:$0xff] }
  0x52   :  { %1875 = vmatprep.subr.bf16.mxu0 %v1874_v41  ;;  %v345_v41 = vld [vmem:[%s4912_s1 + $0x9c8] sm:$0xff]  ;;  %v2070_v43 = vpack.c.bf16 %v304_v36, %v298_v35  ;;  %v371_v35 = vld [vmem:[%s4912_s1 + $0xa98] sm:$0xff] }
  0x53   :  { %2055 = vmatpush1.bf16.msra.mxu1 %v2054_v59  ;;  %v1898_v49 = vpack.c.bf16 %v351_v42, %v345_v41  ;;  %v322_v59 = vld [vmem:[%s4912_s1 + $0x910] sm:$0xff]  ;;  %v377_v36 = vld [vmem:[%s4912_s1 + $0xac8] sm:$0xff]  ;;  %v404_v41 = vld [vmem:[%s4912_s1 + $0xba0] sm:$0xff] }
  0x54   :  { %2057 = vmatprep.subr.bf16.mxu1 %v2056_v62  ;;  %v362_v62 = vld [vmem:[%s4912_s1 + $0xa50] sm:$0xff]  ;;  %v2092_v42 = vpack.c.bf16 %v377_v36, %v371_v35  ;;  %v465_v35 = vld [vmem:[%s4912_s1 + $0xd88] sm:$0xff]  ;;  %v471_v36 = vld [vmem:[%s4912_s1 + $0xdb8] sm:$0xff] }
  0x55   :  { %1877 = vmatpush1.bf16.msra.mxu0 %v1876_v48  ;;  %v316_v48 = vld [vmem:[%s4912_s1 + $0x8e0] sm:$0xff]  ;;  %v1904_v4 = vpack.c.bf16 %v362_v62, %v356_v57  ;;  %v435_v62 = vld [vmem:[%s4912_s1 + $0xc98] sm:$0xff] }
  0x56   :  { %1879 = vmatprep.subr.bf16.mxu0 %v1878_v53  ;;  %v357_v53 = vld [vmem:[%s4912_s1 + $0xa28] sm:$0xff]  ;;  %v2074_v55 = vpack.c.bf16 %v316_v48, %v310_v47  ;;  %v383_v47 = vld [vmem:[%s4912_s1 + $0xaf8] sm:$0xff] }
  0x57   :  { %2059 = vmatpush1.bf16.msra.mxu1 %v2058_v7  ;;  %v1902_v61 = vpack.c.bf16 %v363_v54, %v357_v53  ;;  %v334_v7 = vld [vmem:[%s4912_s1 + $0x970] sm:$0xff]  ;;  %v389_v48 = vld [vmem:[%s4912_s1 + $0xb28] sm:$0xff]  ;;  %v416_v53 = vld [vmem:[%s4912_s1 + $0xc00] sm:$0xff] }
  0x58   :  { %2061 = vmatprep.subr.bf16.mxu1 %v2060_v10  ;;  %v374_v10 = vld [vmem:[%s4912_s1 + $0xab0] sm:$0xff]  ;;  %v2096_v54 = vpack.c.bf16 %v389_v48, %v383_v47  ;;  %v477_v47 = vld [vmem:[%s4912_s1 + $0xde8] sm:$0xff]  ;;  %v483_v48 = vld [vmem:[%s4912_s1 + $0xe18] sm:$0xff] }
  0x59   :  { %1881 = vmatpush1.bf16.msra.mxu0 %v1880_v60  ;;  %v328_v60 = vld [vmem:[%s4912_s1 + $0x940] sm:$0xff]  ;;  %v1908_v16 = vpack.c.bf16 %v374_v10, %v368_v5  ;;  %v441_v10 = vld [vmem:[%s4912_s1 + $0xcc8] sm:$0xff] }
  0x5a   :  { %1883 = vmatprep.subr.bf16.mxu0 %v1882_v1  ;;  %v369_v1 = vld [vmem:[%s4912_s1 + $0xa88] sm:$0xff]  ;;  %v2078_v3 = vpack.c.bf16 %v328_v60, %v322_v59  ;;  %v395_v59 = vld [vmem:[%s4912_s1 + $0xb58] sm:$0xff]  ;;  %v400_v5 = vld [vmem:[%s4912_s1 + $0xb80] sm:$0xff] }
  0x5b   :  { %2063 = vmatpush1.bf16.msra.mxu1 %v2062_v19  ;;  %v1906_v9 = vpack.c.bf16 %v375_v2, %v369_v1  ;;  %v346_v19 = vld [vmem:[%s4912_s1 + $0x9d0] sm:$0xff]  ;;  %v401_v60 = vld [vmem:[%s4912_s1 + $0xb88] sm:$0xff]  ;;  %v428_v2 = vld [vmem:[%s4912_s1 + $0xc60] sm:$0xff] }
  0x5c   :  { %2065 = vmatprep.subr.bf16.mxu1 %v2064_v22  ;;  %v386_v22 = vld [vmem:[%s4912_s1 + $0xb10] sm:$0xff] }
  0x5d   :  { %1885 = vmatpush1.bf16.msra.mxu0 %v1884_v8  ;;  %v340_v8 = vld [vmem:[%s4912_s1 + $0x9a0] sm:$0xff]  ;;  %v1912_v28 = vpack.c.bf16 %v386_v22, %v380_v17  ;;  %v406_v17 = vld [vmem:[%s4912_s1 + $0xbb0] sm:$0xff]  ;;  %v425_v22 = vld [vmem:[%s4912_s1 + $0xc48] sm:$0xff] }
  0x5e   :  { %1887 = vmatprep.subr.bf16.mxu0 %v1886_v13  ;;  %v381_v13 = vld [vmem:[%s4912_s1 + $0xae8] sm:$0xff]  ;;  %v2082_v15 = vpack.c.bf16 %v340_v8, %v334_v7  ;;  %v434_v7 = vld [vmem:[%s4912_s1 + $0xc90] sm:$0xff]  ;;  %v407_v8 = vld [vmem:[%s4912_s1 + $0xbb8] sm:$0xff] }
  0x5f   :  { %2067 = vmatpush1.bf16.msra.mxu1 %v2066_v31  ;;  %v1910_v21 = vpack.c.bf16 %v387_v14, %v381_v13  ;;  %v358_v31 = vld [vmem:[%s4912_s1 + $0xa30] sm:$0xff]  ;;  %v1928_v14 = vpack.c.bf16 %v434_v7, %v428_v2  ;;  %v460_v2 = vld [vmem:[%s4912_s1 + $0xd60] sm:$0xff]  ;;  %v501_v7 = vld [vmem:[%s4912_s1 + $0xea8] sm:$0xff] }
  0x60   :  { %2069 = vmatprep.subr.bf16.mxu1 %v2068_v34  ;;  %v398_v34 = vld [vmem:[%s4912_s1 + $0xb70] sm:$0xff] }
  0x61   :  { %1889 = vmatpush1.bf16.msra.mxu0 %v1888_v20  ;;  %v352_v20 = vld [vmem:[%s4912_s1 + $0xa00] sm:$0xff]  ;;  %v1916_v40 = vpack.c.bf16 %v398_v34, %v392_v29  ;;  %v418_v29 = vld [vmem:[%s4912_s1 + $0xc10] sm:$0xff]  ;;  %v437_v34 = vld [vmem:[%s4912_s1 + $0xca8] sm:$0xff] }
  0x62   :  { %1891 = vmatprep.subr.bf16.mxu0 %v1890_v25  ;;  %v393_v25 = vld [vmem:[%s4912_s1 + $0xb48] sm:$0xff]  ;;  %v2086_v27 = vpack.c.bf16 %v352_v20, %v346_v19  ;;  %v1930_v19 = vpack.c.bf16 %v447_v11, %v441_v10  ;;  %v446_v20 = vld [vmem:[%s4912_s1 + $0xcf0] sm:$0xff]  ;;  %v500_v11 = vld [vmem:[%s4912_s1 + $0xea0] sm:$0xff] }
  0x63   :  { %2071 = vmatpush1.bf16.msra.mxu1 %v2070_v43  ;;  %v1914_v33 = vpack.c.bf16 %v399_v26, %v393_v25  ;;  %v370_v43 = vld [vmem:[%s4912_s1 + $0xa90] sm:$0xff] }
  0x64   :  { %2073 = vmatprep.subr.bf16.mxu1 %v2072_v46  ;;  %v410_v46 = vld [vmem:[%s4912_s1 + $0xbd0] sm:$0xff] }
  0x65   :  { %1893 = vmatpush1.bf16.msra.mxu0 %v1892_v32  ;;  %v364_v32 = vld [vmem:[%s4912_s1 + $0xa60] sm:$0xff]  ;;  %v1920_v52 = vpack.c.bf16 %v410_v46, %v404_v41  ;;  %v430_v41 = vld [vmem:[%s4912_s1 + $0xc70] sm:$0xff]  ;;  %v449_v46 = vld [vmem:[%s4912_s1 + $0xd08] sm:$0xff] }
  0x66   :  { %1895 = vmatprep.subr.bf16.mxu0 %v1894_v37  ;;  %v405_v37 = vld [vmem:[%s4912_s1 + $0xba8] sm:$0xff]  ;;  %v2090_v39 = vpack.c.bf16 %v364_v32, %v358_v31  ;;  %v1934_v31 = vpack.c.bf16 %v459_v24, %v453_v23  ;;  %v458_v32 = vld [vmem:[%s4912_s1 + $0xd50] sm:$0xff]  ;;  %v512_v23 = vld [vmem:[%s4912_s1 + $0xf00] sm:$0xff] }
  0x67   :  { %2075 = vmatpush1.bf16.msra.mxu1 %v2074_v55  ;;  %v1918_v45 = vpack.c.bf16 %v411_v38, %v405_v37  ;;  %v382_v55 = vld [vmem:[%s4912_s1 + $0xaf0] sm:$0xff] }
  0x68   :  { %2077 = vmatprep.subr.bf16.mxu1 %v2076_v58  ;;  %v422_v58 = vld [vmem:[%s4912_s1 + $0xc30] sm:$0xff] }
  0x69   :  { %1897 = vmatpush1.bf16.msra.mxu0 %v1896_v44  ;;  %v376_v44 = vld [vmem:[%s4912_s1 + $0xac0] sm:$0xff]  ;;  %v1924_v1 = vpack.c.bf16 %v422_v58, %v416_v53  ;;  %v442_v53 = vld [vmem:[%s4912_s1 + $0xcd0] sm:$0xff]  ;;  %v461_v58 = vld [vmem:[%s4912_s1 + $0xd68] sm:$0xff] }
  0x6a   :  { %1899 = vmatprep.subr.bf16.mxu0 %v1898_v49  ;;  %v417_v49 = vld [vmem:[%s4912_s1 + $0xc08] sm:$0xff]  ;;  %v2094_v51 = vpack.c.bf16 %v376_v44, %v370_v43  ;;  %v1938_v43 = vpack.c.bf16 %v471_v36, %v465_v35  ;;  %v470_v44 = vld [vmem:[%s4912_s1 + $0xdb0] sm:$0xff]  ;;  %v524_v35 = vld [vmem:[%s4912_s1 + $0xf60] sm:$0xff] }
  0x6b   :  { %2079 = vmatpush1.bf16.msra.mxu1 %v2078_v3  ;;  %v1922_v57 = vpack.c.bf16 %v423_v50, %v417_v49  ;;  %v2100_v3 = vpack.c.bf16 %v401_v60, %v395_v59  ;;  %v489_v59 = vld [vmem:[%s4912_s1 + $0xe48] sm:$0xff]  ;;  %v495_v60 = vld [vmem:[%s4912_s1 + $0xe78] sm:$0xff] }
  0x6c   :  { %2081 = vmatprep.subr.bf16.mxu1 %v2080_v6 }
  0x6d   :  { %1901 = vmatpush1.bf16.msra.mxu0 %v1900_v56  ;;  %v388_v56 = vld [vmem:[%s4912_s1 + $0xb20] sm:$0xff] }
  0x6e   :  { %1903 = vmatprep.subr.bf16.mxu0 %v1902_v61  ;;  %v429_v61 = vld [vmem:[%s4912_s1 + $0xc68] sm:$0xff]  ;;  %v2098_v0 = vpack.c.bf16 %v388_v56, %v382_v55  ;;  %v1942_v55 = vpack.c.bf16 %v483_v48, %v477_v47  ;;  %v482_v56 = vld [vmem:[%s4912_s1 + $0xe10] sm:$0xff]  ;;  %v536_v47 = vld [vmem:[%s4912_s1 + $0xfc0] sm:$0xff] }
  0x6f   :  { %2083 = vmatpush1.bf16.msra.mxu1 %v2082_v15  ;;  %v1926_v6 = vpack.c.bf16 %v435_v62, %v429_v61  ;;  %v440_v15 = vld [vmem:[%s4912_s1 + $0xcc0] sm:$0xff] }
  0x70   :  { %2085 = vmatprep.subr.bf16.mxu1 %v2084_v18  ;;  %v412_v18 = vld [vmem:[%s4912_s1 + $0xbe0] sm:$0xff]  ;;  %v1932_v26 = vpack.c.bf16 %v446_v20, %v440_v15  ;;  %v519_v20 = vld [vmem:[%s4912_s1 + $0xf38] sm:$0xff] }
  0x71   :  { %1905 = vmatpush1.bf16.msra.mxu0 %v1904_v4  ;;  %v394_v4 = vld [vmem:[%s4912_s1 + $0xb50] sm:$0xff]  ;;  %v2106_v25 = vpack.c.bf16 %v412_v18, %v406_v17  ;;  %v479_v17 = vld [vmem:[%s4912_s1 + $0xdf8] sm:$0xff]  ;;  %v485_v18 = vld [vmem:[%s4912_s1 + $0xe28] sm:$0xff] }
  0x72   :  { %1907 = vmatprep.subr.bf16.mxu0 %v1906_v9  ;;  %v413_v9 = vld [vmem:[%s4912_s1 + $0xbe8] sm:$0xff]  ;;  %v2102_v13 = vpack.c.bf16 %v400_v5, %v394_v4  ;;  %v494_v4 = vld [vmem:[%s4912_s1 + $0xe70] sm:$0xff]  ;;  %v467_v5 = vld [vmem:[%s4912_s1 + $0xd98] sm:$0xff]  ;;  %v2128_v24 = vpack.c.bf16 %v485_v18, %v479_v17 }
  0x73   :  { %2087 = vmatpush1.bf16.msra.mxu1 %v2086_v27  ;;  %v452_v27 = vld [vmem:[%s4912_s1 + $0xd20] sm:$0xff] }
  0x74   :  { %2089 = vmatprep.subr.bf16.mxu1 %v2088_v30  ;;  %v424_v30 = vld [vmem:[%s4912_s1 + $0xc40] sm:$0xff]  ;;  %v1936_v38 = vpack.c.bf16 %v458_v32, %v452_v27  ;;  %v531_v32 = vld [vmem:[%s4912_s1 + $0xf98] sm:$0xff] }
  0x75   :  { %1909 = vmatpush1.bf16.msra.mxu0 %v1908_v16  ;;  %v2104_v16 = vpack.c.bf16 %v413_v9, %v407_v8  ;;  %v2110_v37 = vpack.c.bf16 %v424_v30, %v418_v29  ;;  %v507_v8 = vld [vmem:[%s4912_s1 + $0xed8] sm:$0xff]  ;;  %v497_v30 = vld [vmem:[%s4912_s1 + $0xe88] sm:$0xff] }
  0x76   :  { %1911 = vmatprep.subr.bf16.mxu0 %v1910_v21  ;;  %v419_v21 = vld [vmem:[%s4912_s1 + $0xc18] sm:$0xff]  ;;  %v1950_v15 = vpack.c.bf16 %v507_v8, %v501_v7  ;;  %v560_v7 = vld [vmem:[%s4912_s1 + $0x1080] sm:$0xff] }
  0x77   :  { %2091 = vmatpush1.bf16.msra.mxu1 %v2090_v39  ;;  %v464_v39 = vld [vmem:[%s4912_s1 + $0xd80] sm:$0xff]  ;;  %v491_v29 = vld [vmem:[%s4912_s1 + $0xe58] sm:$0xff] }
  0x78   :  { %2093 = vmatprep.subr.bf16.mxu1 %v2092_v42  ;;  %v436_v42 = vld [vmem:[%s4912_s1 + $0xca0] sm:$0xff]  ;;  %v1940_v50 = vpack.c.bf16 %v470_v44, %v464_v39  ;;  %v2132_v36 = vpack.c.bf16 %v497_v30, %v491_v29  ;;  %v543_v44 = vld [vmem:[%s4912_s1 + $0xff8] sm:$0xff] }
  0x79   :  { %1913 = vmatpush1.bf16.msra.mxu0 %v1912_v28  ;;  %v2108_v28 = vpack.c.bf16 %v425_v22, %v419_v21  ;;  %v2114_v49 = vpack.c.bf16 %v436_v42, %v430_v41  ;;  %v503_v41 = vld [vmem:[%s4912_s1 + $0xeb8] sm:$0xff]  ;;  %v509_v42 = vld [vmem:[%s4912_s1 + $0xee8] sm:$0xff] }
  0x7a   :  { %1915 = vmatprep.subr.bf16.mxu0 %v1914_v33  ;;  %v431_v33 = vld [vmem:[%s4912_s1 + $0xc78] sm:$0xff]  ;;  %v2136_v48 = vpack.c.bf16 %v509_v42, %v503_v41  ;;  %v30_v42 = vld [vmem:[%s4913_s0 + $0x20] sm:$0xff] }
  0x7b   :  { %2095 = vmatpush1.bf16.msra.mxu1 %v2094_v51  ;;  %v476_v51 = vld [vmem:[%s4912_s1 + $0xde0] sm:$0xff]  ;;  %v43_v29 = vld [vmem:[%s4912_s1 + $0x58] sm:$0xff] }
  0x7c   :  { %2097 = vmatprep.subr.bf16.mxu1 %v2096_v54  ;;  %v448_v54 = vld [vmem:[%s4912_s1 + $0xd00] sm:$0xff]  ;;  %v1944_v62 = vpack.c.bf16 %v482_v56, %v476_v51  ;;  %v555_v56 = vld [vmem:[%s4912_s1 + $0x1058] sm:$0xff] }
  0x7d   :  { %1917 = vmatpush1.bf16.msra.mxu0 %v1916_v40  ;;  %v2112_v40 = vpack.c.bf16 %v437_v34, %v431_v33  ;;  %v2118_v61 = vpack.c.bf16 %v448_v54, %v442_v53  ;;  %v515_v53 = vld [vmem:[%s4912_s1 + $0xf18] sm:$0xff]  ;;  %v521_v54 = vld [vmem:[%s4912_s1 + $0xf48] sm:$0xff] }
  0x7e   :  { %1919 = vmatprep.subr.bf16.mxu0 %v1918_v45  ;;  %v443_v45 = vld [vmem:[%s4912_s1 + $0xcd8] sm:$0xff] }
  0x7f   :  { %2099 = vmatpush1.bf16.msra.mxu1 %v2098_v0  ;;  %v55_v41 = vld [vmem:[%s4912_s1 + $0xb8] sm:$0xff] }
  0x80   :  { %2101 = vmatprep.subr.bf16.mxu1 %v2100_v3  ;;  %v1946_v3 = vpack.c.bf16 %v495_v60, %v489_v59  ;;  %v548_v59 = vld [vmem:[%s4912_s1 + $0x1020] sm:$0xff]  ;;  %v2140_v60 = vpack.c.bf16 %v521_v54, %v515_v53  ;;  %v61_v53 = vld [vmem:[%s4912_s1 + $0xe8] sm:$0xff]  ;;  %v67_v54 = vld [vmem:[%s4912_s1 + $0x118] sm:$0xff] }
  0x81   :  { %1921 = vmatpush1.bf16.msra.mxu0 %v1920_v52  ;;  %v2116_v52 = vpack.c.bf16 %v449_v46, %v443_v45 }
  0x82   :  { %1923 = vmatprep.subr.bf16.mxu0 %v1922_v57  ;;  %v455_v57 = vld [vmem:[%s4912_s1 + $0xd38] sm:$0xff] }
  0x83   :  { %2103 = vmatpush1.bf16.msra.mxu1 %v2102_v13  ;;  %v2120_v0 = vpack.c.bf16 %v461_v58, %v455_v57  ;;  %v466_v13 = vld [vmem:[%s4912_s1 + $0xd90] sm:$0xff] }
  0x84   :  { %775 = vmatmul.mubr.f32.vlgmr.msra.gmra.mrb[0].mxu0 %v3397_v63  ;;  %2105 = vmatprep.subr.bf16.mxu1 %v2104_v16  ;;  %v506_v16 = vld [vmem:[%s4912_s1 + $0xed0] sm:$0xff] }
  0x85   :  { %1925 = vmatpush1.bf16.msra.mxu0 %v1924_v1  ;;  %1784 = vmatprep.mubr.msk.f32.mxu0 %vm616_vm0, %v31_v12  ;;  %v454_v1 = vld [vmem:[%s4912_s1 + $0xd30] sm:$0xff]  ;;  %v1952_v22 = vpack.c.bf16 %v506_v16, %v500_v11  ;;  %v579_v16 = vld [vmem:[%s4912_s1 + $0x1118] sm:$0x1] }
  0x86   :  { %1927 = vmatprep.subr.bf16.mxu0 %v1926_v6  ;;  %v473_v6 = vld [vmem:[%s4912_s1 + $0xdc8] sm:$0xff]  ;;  %v2122_v9 = vpack.c.bf16 %v460_v2, %v454_v1  ;;  %v527_v1 = vld [vmem:[%s4912_s1 + $0xf78] sm:$0xff] }
  0x87   :  { %2107 = vmatpush1.bf16.msra.mxu1 %v2106_v25  ;;  %v478_v25 = vld [vmem:[%s4912_s1 + $0xdf0] sm:$0xff]  ;;  %v533_v2 = vld [vmem:[%s4912_s1 + $0xfa8] sm:$0xff] }
  0x88   :  { %2109 = vmatprep.subr.bf16.mxu1 %v2108_v28  ;;  %v518_v28 = vld [vmem:[%s4912_s1 + $0xf30] sm:$0xff]  ;;  %v2144_v8 = vpack.c.bf16 %v533_v2, %v527_v1  ;;  %v79_v1 = vld [vmem:[%s4912_s1 + $0x178] sm:$0xff] }
  0x89   :  { %1929 = vmatpush1.bf16.msra.mxu0 %v1928_v14  ;;  %v472_v14 = vld [vmem:[%s4912_s1 + $0xdc0] sm:$0xff]  ;;  %v1956_v34 = vpack.c.bf16 %v518_v28, %v512_v23  ;;  %v37_v28 = vld [vmem:[%s4912_s1 + $0x28] sm:$0xff] }
  0x8a   :  { %1931 = vmatprep.subr.bf16.mxu0 %v1930_v19  ;;  %988 = vmatmul.mubr.f32.vlgmr.msra.gmra.mrb[0].mxu1 %v3397_v63  ;;  %v488_v63 = vld [vmem:[%s4912_s1 + $0xe40] sm:$0xff]  ;;  %v513_v19 = vld [vmem:[%s4912_s1 + $0xf08] sm:$0xff]  ;;  %v2126_v21 = vpack.c.bf16 %v472_v14, %v466_v13  ;;  %v539_v13 = vld [vmem:[%s4912_s1 + $0xfd8] sm:$0xff] }
  0x8b   :  { %2111 = vmatpush1.bf16.msra.mxu1 %v2110_v37  ;;  %1787 = vmatprep.mubr.msk.f32.mxu1 %vm616_vm0, %v31_v12  ;;  %v1948_v10 = vpack.c.bf16 %v494_v4, %v488_v63  ;;  %v2124_v12 = vpack.c.bf16 %v473_v6, %v467_v5  ;;  %v1954_v27 = vpack.c.bf16 %v519_v20, %v513_v19  ;;  %v490_v37 = vld [vmem:[%s4912_s1 + $0xe50] sm:$0xff]  ;;  %v567_v4 = vld [vmem:[%s4912_s1 + $0x10b8] sm:$0xff]  ;;  %v545_v14 = vld [vmem:[%s4912_s1 + $0x1008] sm:$0xff] }
  0x8c   :  { %2113 = vmatprep.subr.bf16.mxu1 %v2112_v40  ;;  %v530_v40 = vld [vmem:[%s4912_s1 + $0xf90] sm:$0xff]  ;;  %v572_v19 = vld [vmem:[%s4912_s1 + $0x10e0] sm:$0xff]  ;;  %v2148_v20 = vpack.c.bf16 %v545_v14, %v539_v13  ;;  %v97_v13 = vld [vmem:[%s4912_s1 + $0x208] sm:$0xff] }
  0x8d   :  { %1933 = vmatpush1.bf16.msra.mxu0 %v1932_v26  ;;  %v484_v26 = vld [vmem:[%s4912_s1 + $0xe20] sm:$0xff]  ;;  %v1960_v46 = vpack.c.bf16 %v530_v40, %v524_v35  ;;  %v49_v40 = vld [vmem:[%s4912_s1 + $0x88] sm:$0xff]  ;;  %v103_v14 = vld [vmem:[%s4912_s1 + $0x238] sm:$0xff] }
  0x8e   :  { %1935 = vmatprep.subr.bf16.mxu0 %v1934_v31  ;;  %v525_v31 = vld [vmem:[%s4912_s1 + $0xf68] sm:$0xff]  ;;  %v2130_v33 = vpack.c.bf16 %v484_v26, %v478_v25  ;;  %v551_v25 = vld [vmem:[%s4912_s1 + $0x1038] sm:$0xff]  ;;  %v556_v35 = vld [vmem:[%s4912_s1 + $0x1060] sm:$0xff] }
  0x8f   :  { %2115 = vmatpush1.bf16.msra.mxu1 %v2114_v49  ;;  %v1958_v39 = vpack.c.bf16 %v531_v32, %v525_v31  ;;  %v502_v49 = vld [vmem:[%s4912_s1 + $0xeb0] sm:$0xff]  ;;  %v557_v26 = vld [vmem:[%s4912_s1 + $0x1068] sm:$0xff]  ;;  %v36_v32 = vld [vmem:[%s4912_s1 + $0x20] sm:$0xff] }
  0x90   :  { %2117 = vmatprep.subr.bf16.mxu1 %v2116_v52  ;;  %v542_v52 = vld [vmem:[%s4912_s1 + $0xff0] sm:$0xff] }
  0x91   :  { %1937 = vmatpush1.bf16.msra.mxu0 %v1936_v38  ;;  %v496_v38 = vld [vmem:[%s4912_s1 + $0xe80] sm:$0xff]  ;;  %v1964_v58 = vpack.c.bf16 %v542_v52, %v536_v47  ;;  %v562_v47 = vld [vmem:[%s4912_s1 + $0x1090] sm:$0xff]  ;;  %v581_v52 = vld [vmem:[%s4912_s1 + $0x1128] sm:$0x1] }
  0x92   :  { %1939 = vmatprep.subr.bf16.mxu0 %v1938_v43  ;;  %v537_v43 = vld [vmem:[%s4912_s1 + $0xfc8] sm:$0xff]  ;;  %v2134_v45 = vpack.c.bf16 %v496_v38, %v490_v37  ;;  %v42_v37 = vld [vmem:[%s4912_s1 + $0x50] sm:$0xff]  ;;  %v563_v38 = vld [vmem:[%s4912_s1 + $0x1098] sm:$0xff] }
  0x93   :  { %2119 = vmatpush1.bf16.msra.mxu1 %v2118_v61  ;;  %v1962_v51 = vpack.c.bf16 %v543_v44, %v537_v43  ;;  %v514_v61 = vld [vmem:[%s4912_s1 + $0xf10] sm:$0xff]  ;;  %v2168_v44 = vpack.c.bf16 %v42_v37, %v36_v32  ;;  %v133_v32 = vld [vmem:[%s4912_s1 + $0x328] sm:$0xff] }
  0x94   :  { %2121 = vmatprep.subr.bf16.mxu1 %v2120_v0  ;;  %v554_v0 = vld [vmem:[%s4912_s1 + $0x1050] sm:$0xff] }
  0x95   :  { %1941 = vmatpush1.bf16.msra.mxu0 %v1940_v50  ;;  %v508_v50 = vld [vmem:[%s4912_s1 + $0xee0] sm:$0xff]  ;;  %v1968_v6 = vpack.c.bf16 %v554_v0, %v548_v59  ;;  %v73_v0 = vld [vmem:[%s4912_s1 + $0x148] sm:$0xff]  ;;  %v1286_v37 = vld [vmem:[%s4914_s3 + $0x10] sm:$0xff] }
  0x96   :  { %1943 = vmatprep.subr.bf16.mxu0 %v1942_v55  ;;  %v549_v55 = vld [vmem:[%s4912_s1 + $0x1028] sm:$0xff]  ;;  %v2138_v57 = vpack.c.bf16 %v508_v50, %v502_v49  ;;  %v2170_v49 = vpack.c.bf16 %v55_v41, %v49_v40  ;;  %v54_v50 = vld [vmem:[%s4912_s1 + $0xb0] sm:$0xff]  ;;  %v580_v59 = vld [vmem:[%s4912_s1 + $0x1120] sm:$0x1] }
  0x97   :  { %2123 = vmatpush1.bf16.msra.mxu1 %v2122_v9  ;;  %v1966_v63 = vpack.c.bf16 %v555_v56, %v549_v55  ;;  %v526_v9 = vld [vmem:[%s4912_s1 + $0xf70] sm:$0xff]  ;;  %v132_v41 = vld [vmem:[%s4912_s1 + $0x320] sm:$0xff] }
  0x98   :  { %2125 = vmatprep.subr.bf16.mxu1 %v2124_v12  ;;  %v566_v12 = vld [vmem:[%s4912_s1 + $0x10b0] sm:$0xff] }
  0x99   :  { %1945 = vmatpush1.bf16.msra.mxu0 %v1944_v62  ;;  %v520_v62 = vld [vmem:[%s4912_s1 + $0xf40] sm:$0xff]  ;;  %v1972_v18 = vpack.c.bf16 %v566_v12, %v560_v7  ;;  %v85_v7 = vld [vmem:[%s4912_s1 + $0x1a8] sm:$0xff]  ;;  %v90_v12 = vld [vmem:[%s4912_s1 + $0x1d0] sm:$0xff] }
  0x9a   :  { %1947 = vmatprep.subr.bf16.mxu0 %v1946_v3  ;;  %v561_v3 = vld [vmem:[%s4912_s1 + $0x1088] sm:$0xff]  ;;  %v2142_v5 = vpack.c.bf16 %v520_v62, %v514_v61  ;;  %v60_v61 = vld [vmem:[%s4912_s1 + $0xe0] sm:$0xff]  ;;  %v66_v62 = vld [vmem:[%s4912_s1 + $0x110] sm:$0xff] }
  0x9b   :  { %2127 = vmatpush1.bf16.msra.mxu1 %v2126_v21  ;;  %v1970_v11 = vpack.c.bf16 %v567_v4, %v561_v3  ;;  %v538_v21 = vld [vmem:[%s4912_s1 + $0xfd0] sm:$0xff]  ;;  %v2176_v3 = vpack.c.bf16 %v66_v62, %v60_v61  ;;  %v2178_v4 = vpack.c.bf16 %v79_v1, %v73_v0  ;;  %v156_v1 = vld [vmem:[%s4912_s1 + $0x3e0] sm:$0xff] }
  0x9c   :  { %2129 = vmatprep.subr.bf16.mxu1 %v2128_v24  ;;  %v578_v24 = vld [vmem:[%s4912_s1 + $0x1110] sm:$0x1] }
  0x9d   :  { %1949 = vmatpush1.bf16.msra.mxu0 %v1948_v10  ;;  %v532_v10 = vld [vmem:[%s4912_s1 + $0xfa0] sm:$0xff]  ;;  %v1977_v31 = vpack.c.bf16 %v578_v24, %v572_v19  ;;  %v109_v19 = vld [vmem:[%s4912_s1 + $0x268] sm:$0xff]  ;;  %v114_v24 = vld [vmem:[%s4912_s1 + $0x290] sm:$0xff] }
  0x9e   :  { %1951 = vmatprep.subr.bf16.mxu0 %v1950_v15  ;;  %v573_v15 = vld [vmem:[%s4912_s1 + $0x10e8] sm:$0xff]  ;;  %v2146_v17 = vpack.c.bf16 %v532_v10, %v526_v9  ;;  %v1294_v61 = vld [vmem:[%s4914_s3 + $0x50] sm:$0xff] }
  0x9f   :  { %2131 = vmatpush1.bf16.msra.mxu1 %v2130_v33  ;;  %v1974_v23 = vpack.c.bf16 %v579_v16, %v573_v15  ;;  %v2152_v33 = vpack.c.bf16 %v557_v26, %v551_v25  ;;  %v2186_v16 = vpack.c.bf16 %v103_v14, %v97_v13  ;;  %v121_v25 = vld [vmem:[%s4912_s1 + $0x2c8] sm:$0xff]  ;;  %v127_v26 = vld [vmem:[%s4912_s1 + $0x2f8] sm:$0xff]  ;;  %v168_v13 = vld [vmem:[%s4912_s1 + $0x440] sm:$0xff] }
  0xa0   :  { %2133 = vmatprep.subr.bf16.mxu1 %v2132_v36  ;;  %v2166_v36 = vpack.c.bf16 %v43_v29, %v37_v28  ;;  %v120_v29 = vld [vmem:[%s4912_s1 + $0x2c0] sm:$0xff]  ;;  %v174_v14 = vld [vmem:[%s4912_s1 + $0x470] sm:$0xff] }
  0xa1   :  { %1953 = vmatpush1.bf16.msra.mxu0 %v1952_v22  ;;  %v544_v22 = vld [vmem:[%s4912_s1 + $0x1000] sm:$0xff] }
  0xa2   :  { %1955 = vmatprep.subr.bf16.mxu0 %v1954_v27  ;;  %v2150_v30 = vpack.c.bf16 %v544_v22, %v538_v21 }
  0xa3   :  { %2135 = vmatpush1.bf16.msra.mxu1 %v2134_v45  ;;  %v48_v45 = vld [vmem:[%s4912_s1 + $0x80] sm:$0xff] }
  0xa4   :  { %2137 = vmatprep.subr.bf16.mxu1 %v2136_v48  ;;  %v568_v48 = vld [vmem:[%s4912_s1 + $0x10c0] sm:$0xff]  ;;  %v2172_v56 = vpack.c.bf16 %v54_v50, %v48_v45  ;;  %v151_v45 = vld [vmem:[%s4912_s1 + $0x3b8] sm:$0xff] }
  0xa5   :  { %1957 = vmatpush1.bf16.msra.mxu0 %v1956_v34  ;;  %v550_v34 = vld [vmem:[%s4912_s1 + $0x1030] sm:$0xff]  ;;  %v2158_v55 = vpack.c.bf16 %v568_v48, %v562_v47  ;;  %v1291_v47 = vld [vmem:[%s4914_s3 + $0x38] sm:$0xff]  ;;  %v1288_v48 = vld [vmem:[%s4914_s3 + $0x20] sm:$0xff] }
  0xa6   :  { %1959 = vmatprep.subr.bf16.mxu0 %v1958_v39  ;;  %v569_v39 = vld [vmem:[%s4912_s1 + $0x10c8] sm:$0xff]  ;;  %v2154_v43 = vpack.c.bf16 %v556_v35, %v550_v34  ;;  %v1287_v35 = vld [vmem:[%s4914_s3 + $0x18] sm:$0xff] }
  0xa7   :  { %2139 = vmatpush1.bf16.msra.mxu1 %v2138_v57  ;;  %v1285_v34 = vld [vmem:[%s4914_s3 + $0x8] sm:$0xff] }
  0xa8   :  { %2141 = vmatprep.subr.bf16.mxu1 %v2140_v60  ;;  %v2174_v60 = vpack.c.bf16 %v67_v54, %v61_v53  ;;  %v144_v53 = vld [vmem:[%s4912_s1 + $0x380] sm:$0xff]  ;;  %v150_v54 = vld [vmem:[%s4912_s1 + $0x3b0] sm:$0xff] }
  0xa9   :  { %1961 = vmatpush1.bf16.msra.mxu0 %v1960_v46  ;;  %v2156_v46 = vpack.c.bf16 %v569_v39, %v563_v38  ;;  %v2352_v38 = vpack.c.bf16 %v1287_v35, %v1285_v34  ;;  %v2204_v0 = vpack.c.bf16 %v150_v54, %v144_v53  ;;  %v1306_v34 = vld [vmem:[%s4914_s3 + $0xb0] sm:$0xff]  ;;  %v217_v53 = vld [vmem:[%s4912_s1 + $0x5c8] sm:$0xff]  ;;  %v223_v54 = vld [vmem:[%s4912_s1 + $0x5f8] sm:$0xff] }
  0xaa   :  { %1963 = vmatprep.subr.bf16.mxu0 %v1962_v51  ;;  %v575_v51 = vld [vmem:[%s4912_s1 + $0x10f8] sm:$0xff] }
  0xab   :  { %2143 = vmatpush1.bf16.msra.mxu1 %v2142_v5  ;;  %v2160_v57 = vpack.c.bf16 %v581_v52, %v575_v51  ;;  %v72_v5 = vld [vmem:[%s4912_s1 + $0x140] sm:$0xff] }
  0xac   :  { %2145 = vmatprep.subr.bf16.mxu1 %v2144_v8  ;;  %v91_v8 = vld [vmem:[%s4912_s1 + $0x1d8] sm:$0xff] }
  0xad   :  { %1965 = vmatpush1.bf16.msra.mxu0 %v1964_v58  ;;  %v574_v58 = vld [vmem:[%s4912_s1 + $0x10f0] sm:$0xff]  ;;  %v2182_v10 = vpack.c.bf16 %v91_v8, %v85_v7  ;;  %v1299_v7 = vld [vmem:[%s4914_s3 + $0x78] sm:$0xff]  ;;  %v1296_v8 = vld [vmem:[%s4914_s3 + $0x60] sm:$0xff] }
  0xae   :  { %1967 = vmatprep.subr.bf16.mxu0 %v1966_v63  ;;  %v2565_v63 = vld [vmem:[%s4913_s0 + $0x8] sm:$0xff]  ;;  %v2163_v2 = vpack.c.bf16 %v580_v59, %v574_v58  ;;  %v1295_v59 = vld [vmem:[%s4914_s3 + $0x58] sm:$0xff] }
  0xaf   :  { %2147 = vmatpush1.bf16.msra.mxu1 %v2146_v17  ;;  %v96_v17 = vld [vmem:[%s4912_s1 + $0x200] sm:$0xff]  ;;  %v1293_v58 = vld [vmem:[%s4914_s3 + $0x48] sm:$0xff] }
  0xb0   :  { %2149 = vmatprep.subr.bf16.mxu1 %v2148_v20  ;;  %v115_v20 = vld [vmem:[%s4912_s1 + $0x298] sm:$0xff]  ;;  %v2360_v62 = vpack.c.bf16 %v1295_v59, %v1293_v58  ;;  %v1314_v58 = vld [vmem:[%s4914_s3 + $0xf0] sm:$0xff] }
  0xb1   :  { %1969 = vmatpush1.bf16.msra.mxu0 %v1968_v6  ;;  %v78_v6 = vld [vmem:[%s4912_s1 + $0x170] sm:$0xff]  ;;  %v2190_v22 = vpack.c.bf16 %v115_v20, %v109_v19  ;;  %v1303_v19 = vld [vmem:[%s4914_s3 + $0x98] sm:$0xff]  ;;  %v1300_v20 = vld [vmem:[%s4914_s3 + $0x80] sm:$0xff] }
  0xb2   :  { %1971 = vmatprep.subr.bf16.mxu0 %v1970_v11  ;;  %v2180_v9 = vpack.c.bf16 %v78_v6, %v72_v5  ;;  %v84_v11 = vld [vmem:[%s4912_s1 + $0x1a0] sm:$0xff]  ;;  %v175_v5 = vld [vmem:[%s4912_s1 + $0x478] sm:$0xff]  ;;  %v1297_v6 = vld [vmem:[%s4914_s3 + $0x68] sm:$0xff] }
  0xb3   :  { %2151 = vmatpush1.bf16.msra.mxu1 %v2150_v30  ;;  %v2184_v15 = vpack.c.bf16 %v90_v12, %v84_v11  ;;  %v126_v30 = vld [vmem:[%s4912_s1 + $0x2f0] sm:$0xff] }
  0xb4   :  { %2153 = vmatprep.subr.bf16.mxu1 %v2152_v33  ;;  %v139_v33 = vld [vmem:[%s4912_s1 + $0x358] sm:$0xff]  ;;  %v2196_v40 = vpack.c.bf16 %v126_v30, %v120_v29  ;;  %v193_v29 = vld [vmem:[%s4912_s1 + $0x508] sm:$0xff] }
  0xb5   :  { %1973 = vmatpush1.bf16.msra.mxu0 %v1972_v18  ;;  %v102_v18 = vld [vmem:[%s4912_s1 + $0x230] sm:$0xff]  ;;  %v199_v30 = vld [vmem:[%s4912_s1 + $0x538] sm:$0xff] }
  0xb6   :  { %1976 = vmatprep.subr.msk.bf16.mxu0 %vm3713_vm3, %v1974_v23  ;;  %v2188_v21 = vpack.c.bf16 %v102_v18, %v96_v17  ;;  %v108_v23 = vld [vmem:[%s4912_s1 + $0x260] sm:$0xff]  ;;  %v187_v17 = vld [vmem:[%s4912_s1 + $0x4d8] sm:$0xff]  ;;  %v1301_v18 = vld [vmem:[%s4914_s3 + $0x88] sm:$0xff] }
  0xb7   :  { %2155 = vmatpush1.bf16.msra.mxu1 %v2154_v43  ;;  %v2192_v28 = vpack.c.bf16 %v114_v24, %v108_v23  ;;  %v2198_v43 = vpack.c.bf16 %v139_v33, %v133_v32  ;;  %v2212_v24 = vpack.c.bf16 %v174_v14, %v168_v13  ;;  %v1307_v32 = vld [vmem:[%s4914_s3 + $0xb8] sm:$0xff]  ;;  %v1304_v33 = vld [vmem:[%s4914_s3 + $0xa0] sm:$0xff]  ;;  %v1322_v14 = vld [vmem:[%s4914_s3 + $0x130] sm:$0xff] }
  0xb8   :  { %2157 = vmatprep.subr.bf16.mxu1 %v2156_v46  ;;  %v1289_v46 = vld [vmem:[%s4914_s3 + $0x28] sm:$0xff] }
  0xb9   :  { %1979 = vmatpush1.bf16.msk.msra.mxu0 %vm3713_vm3, %v1977_v31  ;;  %v2194_v31 = vpack.c.bf16 %v127_v26, %v121_v25  ;;  %v2356_v50 = vpack.c.bf16 %v1291_v47, %v1289_v46  ;;  %v180_v25 = vld [vmem:[%s4912_s1 + $0x4a0] sm:$0xff]  ;;  %v186_v26 = vld [vmem:[%s4912_s1 + $0x4d0] sm:$0xff] }
  0xba   :  { %2167 = vmatprep.subr.bf16.mxu0 %v2166_v36  ;;  %v1284_v36 = vld [vmem:[%s4914_s3] sm:$0xff]  ;;  %v1310_v46 = vld [vmem:[%s4914_s3 + $0xd0] sm:$0xff] }
  0xbb   :  { %2159 = vmatpush1.bf16.msra.mxu1 %v2158_v55  ;;  %v2354_v39 = vpack.c.bf16 %v1286_v37, %v1284_v36  ;;  %v2374_v36 = vpack.c.bf16 %v1306_v34, %v1304_v33  ;;  %v2216_v37 = vpack.c.bf16 %v186_v26, %v180_v25  ;;  %v1326_v25 = vld [vmem:[%s4914_s3 + $0x150] sm:$0xff]  ;;  %v253_v33 = vld [vmem:[%s4912_s1 + $0x6e8] sm:$0xff]  ;;  %v259_v34 = vld [vmem:[%s4912_s1 + $0x718] sm:$0xff] }
  0xbc   :  { %846 = vmatmul.mubr.f32.vlgmr.msra.gmra.mrb[0].mxu0 %v30_v42  ;;  %2162 = vmatprep.subr.msk.bf16.mxu1 %vm3713_vm3, %v2160_v57  ;;  %v163_v57 = vld [vmem:[%s4912_s1 + $0x418] sm:$0xff] }
  0xbd   :  { %2169 = vmatpush1.bf16.msra.mxu0 %v2168_v44  ;;  %1129 = vmatprep.mubr.f32.mxu0 %v2565_v63  ;;  %v145_v44 = vld [vmem:[%s4912_s1 + $0x388] sm:$0xff] }
  0xbe   :  { %2171 = vmatprep.subr.bf16.mxu0 %v2170_v49  ;;  %v1290_v49 = vld [vmem:[%s4914_s3 + $0x30] sm:$0xff]  ;;  %v2202_v55 = vpack.c.bf16 %v151_v45, %v145_v44  ;;  %v1311_v44 = vld [vmem:[%s4914_s3 + $0xd8] sm:$0xff]  ;;  %v1308_v45 = vld [vmem:[%s4914_s3 + $0xc0] sm:$0xff] }
  0xbf   :  { %2165 = vmatpush1.bf16.msk.msra.mxu1 %vm3713_vm3, %v2163_v2  ;;  %v2358_v51 = vpack.c.bf16 %v1290_v49, %v1288_v48  ;;  %v162_v2 = vld [vmem:[%s4912_s1 + $0x410] sm:$0xff]  ;;  %v2378_v48 = vpack.c.bf16 %v1310_v46, %v1308_v45  ;;  %v252_v45 = vld [vmem:[%s4912_s1 + $0x6e0] sm:$0xff] }
  0xc0   :  { %2353 = vmatprep.subr.bf16.mxu1 %v2352_v38  ;;  %v2208_v12 = vpack.c.bf16 %v162_v2, %v156_v1  ;;  %v192_v38 = vld [vmem:[%s4912_s1 + $0x500] sm:$0xff]  ;;  %v229_v1 = vld [vmem:[%s4912_s1 + $0x628] sm:$0xff]  ;;  %v258_v46 = vld [vmem:[%s4912_s1 + $0x710] sm:$0xff] }
  0xc1   :  { %2173 = vmatpush1.bf16.msra.mxu0 %v2172_v56  ;;  %v157_v56 = vld [vmem:[%s4912_s1 + $0x3e8] sm:$0xff] }
  0xc2   :  { %2175 = vmatprep.subr.bf16.mxu0 %v2174_v60  ;;  %1059 = vmatmul.mubr.f32.vlgmr.msra.gmra.mrb[0].mxu1 %v30_v42  ;;  %v138_v42 = vld [vmem:[%s4912_s1 + $0x350] sm:$0xff]  ;;  %v1292_v60 = vld [vmem:[%s4914_s3 + $0x40] sm:$0xff]  ;;  %v1317_v2 = vld [vmem:[%s4914_s3 + $0x108] sm:$0xff] }
  0xc3   :  { %2355 = vmatpush1.bf16.msra.mxu1 %v2354_v39  ;;  %v2200_v52 = vpack.c.bf16 %v138_v42, %v132_v41  ;;  %v2362_v63 = vpack.c.bf16 %v1294_v61, %v1292_v60  ;;  %v198_v39 = vld [vmem:[%s4912_s1 + $0x530] sm:$0xff]  ;;  %v205_v41 = vld [vmem:[%s4912_s1 + $0x568] sm:$0xff]  ;;  %v211_v42 = vld [vmem:[%s4912_s1 + $0x598] sm:$0xff] }
  0xc4   :  { %2357 = vmatprep.subr.bf16.mxu1 %v2356_v50  ;;  %v2220_v49 = vpack.c.bf16 %v198_v39, %v192_v38  ;;  %v204_v50 = vld [vmem:[%s4912_s1 + $0x560] sm:$0xff]  ;;  %v1330_v39 = vld [vmem:[%s4914_s3 + $0x170] sm:$0xff] }
  0xc5   :  { %2177 = vmatpush1.bf16.msra.mxu0 %v2176_v3  ;;  %v2206_v3 = vpack.c.bf16 %v163_v57, %v157_v56  ;;  %v1315_v56 = vld [vmem:[%s4914_s3 + $0xf8] sm:$0xff]  ;;  %v1312_v57 = vld [vmem:[%s4914_s3 + $0xe0] sm:$0xff] }
  0xc6   :  { %2179 = vmatprep.subr.bf16.mxu0 %v2178_v4  ;;  %v169_v4 = vld [vmem:[%s4912_s1 + $0x448] sm:$0xff]  ;;  %v2382_v60 = vpack.c.bf16 %v1314_v58, %v1312_v57  ;;  %v1328_v38 = vld [vmem:[%s4914_s3 + $0x160] sm:$0xff]  ;;  %v270_v58 = vld [vmem:[%s4912_s1 + $0x770] sm:$0xff] }
  0xc7   :  { %2359 = vmatpush1.bf16.msra.mxu1 %v2358_v51  ;;  %v210_v51 = vld [vmem:[%s4912_s1 + $0x590] sm:$0xff]  ;;  %v264_v57 = vld [vmem:[%s4912_s1 + $0x740] sm:$0xff] }
  0xc8   :  { %2361 = vmatprep.subr.bf16.mxu1 %v2360_v62  ;;  %v2224_v61 = vpack.c.bf16 %v210_v51, %v204_v50  ;;  %v216_v62 = vld [vmem:[%s4912_s1 + $0x5c0] sm:$0xff] }
  0xc9   :  { %2181 = vmatpush1.bf16.msra.mxu0 %v2180_v9  ;;  %v1298_v9 = vld [vmem:[%s4914_s3 + $0x70] sm:$0xff]  ;;  %v1332_v51 = vld [vmem:[%s4914_s3 + $0x180] sm:$0xff] }
  0xca   :  { %2183 = vmatprep.subr.bf16.mxu0 %v2182_v10  ;;  %v2364_v10 = vpack.c.bf16 %v1299_v7, %v1297_v6  ;;  %v2366_v11 = vpack.c.bf16 %v1298_v9, %v1296_v8  ;;  %v1316_v6 = vld [vmem:[%s4914_s3 + $0x100] sm:$0xff]  ;;  %v1318_v7 = vld [vmem:[%s4914_s3 + $0x110] sm:$0xff]  ;;  %v1321_v9 = vld [vmem:[%s4914_s3 + $0x128] sm:$0xff] }
  0xcb   :  { %2363 = vmatpush1.bf16.msra.mxu1 %v2362_v63  ;;  %v222_v63 = vld [vmem:[%s4912_s1 + $0x5f0] sm:$0xff]  ;;  %v2386_v8 = vpack.c.bf16 %v1318_v7, %v1316_v6  ;;  %v289_v7 = vld [vmem:[%s4912_s1 + $0x808] sm:$0xff] }
  0xcc   :  { %2365 = vmatprep.subr.bf16.mxu1 %v2364_v10  ;;  %v1323_v10 = vld [vmem:[%s4914_s3 + $0x138] sm:$0xff]  ;;  %v282_v6 = vld [vmem:[%s4912_s1 + $0x7d0] sm:$0xff] }
  0xcd   :  { %2185 = vmatpush1.bf16.msra.mxu0 %v2184_v15  ;;  %v2210_v15 = vpack.c.bf16 %v175_v5, %v169_v4  ;;  %v235_v4 = vld [vmem:[%s4912_s1 + $0x658] sm:$0xff]  ;;  %v2388_v13 = vpack.c.bf16 %v1323_v10, %v1321_v9 }
  0xce   :  { %2187 = vmatprep.subr.bf16.mxu0 %v2186_v16  ;;  %v181_v16 = vld [vmem:[%s4912_s1 + $0x4a8] sm:$0xff] }
  0xcf   :  { %2367 = vmatpush1.bf16.msra.mxu1 %v2366_v11  ;;  %v1320_v11 = vld [vmem:[%s4914_s3 + $0x120] sm:$0xff] }
  0xd1   :  { %2189 = vmatpush1.bf16.msra.mxu0 %v2188_v21  ;;  %v1302_v21 = vld [vmem:[%s4914_s3 + $0x90] sm:$0xff] }
  0xd2   :  { %2191 = vmatprep.subr.bf16.mxu0 %v2190_v22  ;;  %v2368_v22 = vpack.c.bf16 %v1303_v19, %v1301_v18  ;;  %v2370_v23 = vpack.c.bf16 %v1302_v21, %v1300_v20  ;;  %v228_v18 = vld [vmem:[%s4912_s1 + $0x620] sm:$0xff]  ;;  %v234_v19 = vld [vmem:[%s4912_s1 + $0x650] sm:$0xff]  ;;  %v241_v20 = vld [vmem:[%s4912_s1 + $0x688] sm:$0xff] }
  0xd3   :  { %v247_v21 = vld [vmem:[%s4912_s1 + $0x6b8] sm:$0xff]  ;;  %v2232_v26 = vpack.c.bf16 %v234_v19, %v228_v18 }
  0xd4   :  { %2369 = vmatprep.subr.bf16.mxu1 %v2368_v22  ;;  %v2390_v22 = vpack.c.bf16 %v1322_v14, %v1320_v11  ;;  %v1340_v11 = vld [vmem:[%s4914_s3 + $0x1c0] sm:$0xff]  ;;  %v307_v18 = vld [vmem:[%s4912_s1 + $0x898] sm:$0xff] }
  0xd5   :  { %2193 = vmatpush1.bf16.msra.mxu0 %v2192_v28  ;;  %v2214_v28 = vpack.c.bf16 %v187_v17, %v181_v16  ;;  %2371 = vmatpush1.bf16.msra.mxu1 %v2370_v23  ;;  %v1327_v16 = vld [vmem:[%s4914_s3 + $0x158] sm:$0xff]  ;;  %v2230_v17 = vpack.c.bf16 %v235_v4, %v229_v1  ;;  %v2244_v1 = vpack.c.bf16 %v270_v58, %v264_v57  ;;  %v354_v57 = vld [vmem:[%s4912_s1 + $0xa10] sm:$0xff]  ;;  %v361_v58 = vld [vmem:[%s4912_s1 + $0xa48] sm:$0xff] }
  0xd6   :  { %2195 = vmatprep.subr.bf16.mxu0 %v2194_v31  ;;  %v1305_v31 = vld [vmem:[%s4914_s3 + $0xa8] sm:$0xff] }
  0xd7   :  { %v2372_v35 = vpack.c.bf16 %v1307_v32, %v1305_v31  ;;  %v240_v31 = vld [vmem:[%s4912_s1 + $0x680] sm:$0xff]  ;;  %v246_v32 = vld [vmem:[%s4912_s1 + $0x6b0] sm:$0xff] }
  0xd9   :  { %2197 = vmatpush1.bf16.msra.mxu0 %v2196_v40  ;;  %v2218_v40 = vpack.c.bf16 %v199_v30, %v193_v29  ;;  %2373 = vmatprep.subr.bf16.mxu1 %v2372_v35  ;;  %v1331_v29 = vld [vmem:[%s4914_s3 + $0x178] sm:$0xff]  ;;  %v2234_v30 = vpack.c.bf16 %v247_v21, %v241_v20  ;;  %v300_v21 = vld [vmem:[%s4912_s1 + $0x860] sm:$0xff] }
  0xda   :  { %2199 = vmatprep.subr.bf16.mxu0 %v2198_v43  ;;  %v1309_v43 = vld [vmem:[%s4914_s3 + $0xc8] sm:$0xff]  ;;  %2375 = vmatpush1.bf16.msra.mxu1 %v2374_v36  ;;  %v2566_v36 = vld [vmem:[%s4913_s0] sm:$0xff] }
  0xdb   :  { %v2376_v47 = vpack.c.bf16 %v1311_v44, %v1309_v43  ;;  %v1335_v43 = vld [vmem:[%s4914_s3 + $0x198] sm:$0xff]  ;;  %v2238_v44 = vpack.c.bf16 %v259_v34, %v253_v33  ;;  %v312_v34 = vld [vmem:[%s4912_s1 + $0x8c0] sm:$0xff] }
  0xdd   :  { %2201 = vmatpush1.bf16.msra.mxu0 %v2200_v52  ;;  %v2222_v52 = vpack.c.bf16 %v211_v42, %v205_v41  ;;  %2377 = vmatprep.subr.bf16.mxu1 %v2376_v47  ;;  %v2567_v41 = vld [vmem:[%s4913_s0 + $0x18] sm:$0xff]  ;;  %v1333_v42 = vld [vmem:[%s4914_s3 + $0x188] sm:$0xff] }
  0xde   :  { %2203 = vmatprep.subr.bf16.mxu0 %v2202_v55  ;;  %v1313_v55 = vld [vmem:[%s4914_s3 + $0xe8] sm:$0xff]  ;;  %2379 = vmatpush1.bf16.msra.mxu1 %v2378_v48  ;;  %v271_v48 = vld [vmem:[%s4912_s1 + $0x778] sm:$0xff]  ;;  %v2400_v50 = vpack.c.bf16 %v1335_v43, %v1333_v42 }
  0xdf   :  { %v2380_v59 = vpack.c.bf16 %v1315_v56, %v1313_v55  ;;  %v265_v47 = vld [vmem:[%s4912_s1 + $0x748] sm:$0xff]  ;;  %v1339_v55 = vld [vmem:[%s4914_s3 + $0x1b8] sm:$0xff] }
  0xe0   :  { %v2242_v56 = vpack.c.bf16 %v271_v48, %v265_v47  ;;  %v343_v47 = vld [vmem:[%s4912_s1 + $0x9b8] sm:$0xff] }
  0xe1   :  { %2205 = vmatpush1.bf16.msra.mxu0 %v2204_v0  ;;  %v2226_v0 = vpack.c.bf16 %v223_v54, %v217_v53  ;;  %2381 = vmatprep.subr.bf16.mxu1 %v2380_v59  ;;  %v2240_v53 = vpack.c.bf16 %v258_v46, %v252_v45  ;;  %v1337_v54 = vld [vmem:[%s4914_s3 + $0x1a8] sm:$0xff]  ;;  %v330_v45 = vld [vmem:[%s4912_s1 + $0x950] sm:$0xff] }
  0xe2   :  { %2207 = vmatprep.subr.bf16.mxu0 %v2206_v3  ;;  %v1319_v3 = vld [vmem:[%s4914_s3 + $0x118] sm:$0xff]  ;;  %2383 = vmatpush1.bf16.msra.mxu1 %v2382_v60  ;;  %v277_v59 = vld [vmem:[%s4912_s1 + $0x7a8] sm:$0xff] }
  0xe3   :  { %v2384_v5 = vpack.c.bf16 %v1319_v3, %v1317_v2  ;;  %v283_v60 = vld [vmem:[%s4912_s1 + $0x7d8] sm:$0xff]  ;;  %v1341_v2 = vld [vmem:[%s4914_s3 + $0x1c8] sm:$0xff] }
  0xe4   :  { %v1343_v3 = vld [vmem:[%s4914_s3 + $0x1d8] sm:$0xff]  ;;  %v2246_v4 = vpack.c.bf16 %v283_v60, %v277_v59  ;;  %v337_v46 = vld [vmem:[%s4912_s1 + $0x988] sm:$0xff] }
  0xe5   :  { %2209 = vmatpush1.bf16.msra.mxu0 %v2208_v12  ;;  %v2228_v12 = vpack.c.bf16 %v222_v63, %v216_v62  ;;  %2385 = vmatprep.subr.bf16.mxu1 %v2384_v5  ;;  %v2404_v62 = vpack.c.bf16 %v1339_v55, %v1337_v54  ;;  %v1336_v63 = vld [vmem:[%s4914_s3 + $0x1a0] sm:$0xff]  ;;  %v2408_v10 = vpack.c.bf16 %v1343_v3, %v1341_v2  ;;  %v367_v59 = vld [vmem:[%s4912_s1 + $0xa78] sm:$0xff] }
  0xe6   :  { %2211 = vmatprep.subr.bf16.mxu0 %v2210_v15  ;;  %v1325_v15 = vld [vmem:[%s4914_s3 + $0x148] sm:$0xff]  ;;  %2387 = vmatpush1.bf16.msra.mxu1 %v2386_v8  ;;  %v276_v5 = vld [vmem:[%s4912_s1 + $0x7a0] sm:$0xff]  ;;  %v295_v8 = vld [vmem:[%s4912_s1 + $0x838] sm:$0xff] }
  0xe7   :  { %2389 = vmatprep.subr.bf16.mxu1 %v2388_v13  ;;  %v2392_v23 = vpack.c.bf16 %v1327_v16, %v1325_v15  ;;  %v2248_v13 = vpack.c.bf16 %v282_v6, %v276_v5  ;;  %v2250_v14 = vpack.c.bf16 %v295_v8, %v289_v7  ;;  %v288_v15 = vld [vmem:[%s4912_s1 + $0x800] sm:$0xff]  ;;  %v294_v16 = vld [vmem:[%s4912_s1 + $0x830] sm:$0xff]  ;;  %v385_v6 = vld [vmem:[%s4912_s1 + $0xb08] sm:$0xff] }
  0xe8   :  { %v2252_v20 = vpack.c.bf16 %v294_v16, %v288_v15  ;;  %v378_v5 = vld [vmem:[%s4912_s1 + $0xad0] sm:$0xff]  ;;  %v391_v7 = vld [vmem:[%s4912_s1 + $0xb38] sm:$0xff]  ;;  %v396_v16 = vld [vmem:[%s4912_s1 + $0xb60] sm:$0xff] }
  0xe9   :  { %2213 = vmatpush1.bf16.msra.mxu0 %v2212_v24  ;;  %v1324_v24 = vld [vmem:[%s4914_s3 + $0x140] sm:$0xff] }
  0xea   :  { %2215 = vmatprep.subr.bf16.mxu0 %v2214_v28  ;;  %v1329_v28 = vld [vmem:[%s4914_s3 + $0x168] sm:$0xff]  ;;  %2391 = vmatpush1.bf16.msra.mxu1 %v2390_v22  ;;  %v2394_v35 = vpack.c.bf16 %v1326_v25, %v1324_v24  ;;  %v306_v22 = vld [vmem:[%s4912_s1 + $0x890] sm:$0xff] }
  0xeb   :  { %2393 = vmatprep.subr.bf16.mxu1 %v2392_v23  ;;  %v313_v24 = vld [vmem:[%s4912_s1 + $0x8c8] sm:$0xff]  ;;  %v2256_v33 = vpack.c.bf16 %v306_v22, %v300_v21  ;;  %v408_v22 = vld [vmem:[%s4912_s1 + $0xbc0] sm:$0xff] }
  0xec   :  { %v1345_v25 = vld [vmem:[%s4914_s3 + $0x1e8] sm:$0xff] }
  0xed   :  { %2217 = vmatpush1.bf16.msra.mxu0 %v2216_v37  ;;  %v2396_v37 = vpack.c.bf16 %v1331_v29, %v1329_v28  ;;  %v319_v28 = vld [vmem:[%s4912_s1 + $0x8f8] sm:$0xff] }
  0xee   :  { %2219 = vmatprep.subr.bf16.mxu0 %v2218_v40  ;;  %v2236_v40 = vpack.c.bf16 %v246_v32, %v240_v31  ;;  %2395 = vmatpush1.bf16.msra.mxu1 %v2394_v35  ;;  %v1346_v31 = vld [vmem:[%s4914_s3 + $0x1f0] sm:$0xff]  ;;  %v2258_v35 = vpack.c.bf16 %v319_v28, %v313_v24  ;;  %v421_v24 = vld [vmem:[%s4912_s1 + $0xc28] sm:$0xff] }
  0xef   :  { %2397 = vmatprep.subr.bf16.mxu1 %v2396_v37  ;;  %v1349_v37 = vld [vmem:[%s4914_s3 + $0x208] sm:$0xff] }
  0xf1   :  { %2221 = vmatpush1.bf16.msra.mxu0 %v2220_v49  ;;  %v2398_v49 = vpack.c.bf16 %v1330_v39, %v1328_v38  ;;  %v1351_v38 = vld [vmem:[%s4914_s3 + $0x218] sm:$0xff]  ;;  %v325_v39 = vld [vmem:[%s4912_s1 + $0x928] sm:$0xff] }
  0xf2   :  { %2223 = vmatprep.subr.bf16.mxu0 %v2222_v52  ;;  %v1334_v52 = vld [vmem:[%s4914_s3 + $0x190] sm:$0xff] }
  0xf3   :  { %2399 = vmatpush1.bf16.msra.mxu1 %v2398_v49  ;;  %v2266_v49 = vpack.c.bf16 %v343_v47, %v337_v46  ;;  %v463_v46 = vld [vmem:[%s4912_s1 + $0xd78] sm:$0xff] }
  0xf4   :  { %2401 = vmatprep.subr.bf16.mxu1 %v2400_v50  ;;  %v336_v50 = vld [vmem:[%s4912_s1 + $0x980] sm:$0xff] }
  0xf5   :  { %2225 = vmatpush1.bf16.msra.mxu0 %v2224_v61  ;;  %v2402_v61 = vpack.c.bf16 %v1334_v52, %v1332_v51  ;;  %v342_v51 = vld [vmem:[%s4912_s1 + $0x9b0] sm:$0xff]  ;;  %v349_v52 = vld [vmem:[%s4912_s1 + $0x9e8] sm:$0xff] }
  0xf6   :  { %2227 = vmatprep.subr.bf16.mxu0 %v2226_v0  ;;  %v1338_v0 = vld [vmem:[%s4914_s3 + $0x1b0] sm:$0xff]  ;;  %v2268_v54 = vpack.c.bf16 %v342_v51, %v336_v50  ;;  %v469_v51 = vld [vmem:[%s4912_s1 + $0xda8] sm:$0xff] }
  0xf7   :  { %2403 = vmatpush1.bf16.msra.mxu1 %v2402_v61  ;;  %v2406_v9 = vpack.c.bf16 %v1338_v0, %v1336_v63  ;;  %v2274_v61 = vpack.c.bf16 %v367_v59, %v361_v58  ;;  %v366_v63 = vld [vmem:[%s4912_s1 + $0xa70] sm:$0xff]  ;;  %v373_v0 = vld [vmem:[%s4912_s1 + $0xaa8] sm:$0xff]  ;;  %v487_v58 = vld [vmem:[%s4912_s1 + $0xe38] sm:$0xff] }
  0xf8   :  { %2405 = vmatprep.subr.bf16.mxu1 %v2404_v62  ;;  %v360_v62 = vld [vmem:[%s4912_s1 + $0xa40] sm:$0xff]  ;;  %v462_v50 = vld [vmem:[%s4912_s1 + $0xd70] sm:$0xff] }
  0xf9   :  { %2229 = vmatpush1.bf16.msra.mxu0 %v2228_v12  ;;  %v1342_v12 = vld [vmem:[%s4914_s3 + $0x1d0] sm:$0xff]  ;;  %v2276_v2 = vpack.c.bf16 %v366_v63, %v360_v62  ;;  %v493_v63 = vld [vmem:[%s4912_s1 + $0xe68] sm:$0xff] }
  0xfa   :  { %2231 = vmatprep.subr.bf16.mxu0 %v2230_v17  ;;  %v301_v17 = vld [vmem:[%s4912_s1 + $0x868] sm:$0xff]  ;;  %v2410_v19 = vpack.c.bf16 %v1342_v12, %v1340_v11  ;;  %v390_v11 = vld [vmem:[%s4912_s1 + $0xb30] sm:$0xff] }
  0xfb   :  { %2407 = vmatpush1.bf16.msra.mxu1 %v2406_v9  ;;  %v2254_v23 = vpack.c.bf16 %v307_v18, %v301_v17  ;;  %v2282_v9 = vpack.c.bf16 %v391_v7, %v385_v6  ;;  %v397_v12 = vld [vmem:[%s4912_s1 + $0xb68] sm:$0xff]  ;;  %v402_v17 = vld [vmem:[%s4912_s1 + $0xb90] sm:$0xff]  ;;  %v511_v6 = vld [vmem:[%s4912_s1 + $0xef8] sm:$0xff] }
  0xfc   :  { %1130 = vmatmul.mubr.f32.vlgmr.msra.gmra.mrb[2].mxu0 %v2566_v36  ;;  %2409 = vmatprep.subr.bf16.mxu1 %v2408_v10  ;;  %v318_v36 = vld [vmem:[%s4912_s1 + $0x8f0] sm:$0xff]  ;;  %v384_v10 = vld [vmem:[%s4912_s1 + $0xb00] sm:$0xff]  ;;  %v409_v18 = vld [vmem:[%s4912_s1 + $0xbc8] sm:$0xff] }
  0xfd   :  { %2233 = vmatpush1.bf16.msra.mxu0 %v2232_v26  ;;  %1200 = vmatprep.mubr.f32.mxu0 %v2567_v41  ;;  %v1347_v26 = vld [vmem:[%s4914_s3 + $0x1f8] sm:$0xff]  ;;  %v2416_v41 = vpack.c.bf16 %v1351_v38, %v1349_v37  ;;  %v2260_v42 = vpack.c.bf16 %v318_v36, %v312_v34  ;;  %v438_v36 = vld [vmem:[%s4912_s1 + $0xcb0] sm:$0xff]  ;;  %v445_v37 = vld [vmem:[%s4912_s1 + $0xce8] sm:$0xff] }
  0xfe   :  { %2235 = vmatprep.subr.bf16.mxu0 %v2234_v30  ;;  %v2412_v29 = vpack.c.bf16 %v1347_v26, %v1345_v25  ;;  %v1344_v30 = vld [vmem:[%s4914_s3 + $0x1e0] sm:$0xff]  ;;  %v427_v25 = vld [vmem:[%s4912_s1 + $0xc58] sm:$0xff]  ;;  %v486_v62 = vld [vmem:[%s4912_s1 + $0xe30] sm:$0xff] }
  0xff   :  { %2411 = vmatpush1.bf16.msra.mxu1 %v2410_v19  ;;  %v2414_v32 = vpack.c.bf16 %v1346_v31, %v1344_v30  ;;  %v415_v19 = vld [vmem:[%s4912_s1 + $0xbf8] sm:$0xff]  ;;  %v2294_v28 = vpack.c.bf16 %v427_v25, %v421_v24  ;;  %v426_v30 = vld [vmem:[%s4912_s1 + $0xc50] sm:$0xff]  ;;  %v433_v31 = vld [vmem:[%s4912_s1 + $0xc88] sm:$0xff] }
 0x100   :  { %2413 = vmatprep.subr.bf16.mxu1 %v2412_v29  ;;  %v2290_v21 = vpack.c.bf16 %v415_v19, %v409_v18  ;;  %v420_v29 = vld [vmem:[%s4912_s1 + $0xc20] sm:$0xff]  ;;  %v451_v38 = vld [vmem:[%s4912_s1 + $0xd18] sm:$0xff] }
 0x101   :  { %2237 = vmatpush1.bf16.msra.mxu0 %v2236_v40  ;;  %v331_v40 = vld [vmem:[%s4912_s1 + $0x958] sm:$0xff] }
 0x102   :  { %2239 = vmatprep.subr.bf16.mxu0 %v2238_v44  ;;  %v2262_v43 = vpack.c.bf16 %v331_v40, %v325_v39  ;;  %v324_v44 = vld [vmem:[%s4912_s1 + $0x920] sm:$0xff]  ;;  %v2568_v39 = vld [vmem:[%s4913_s0 + $0x10] sm:$0xff]  ;;  %v535_v18 = vld [vmem:[%s4912_s1 + $0xfb8] sm:$0xff] }
 0x103   :  { %2415 = vmatpush1.bf16.msra.mxu1 %v2414_v32  ;;  %v2264_v48 = vpack.c.bf16 %v330_v45, %v324_v44  ;;  %v439_v32 = vld [vmem:[%s4912_s1 + $0xcb8] sm:$0xff]  ;;  %v450_v44 = vld [vmem:[%s4912_s1 + $0xd10] sm:$0xff]  ;;  %v457_v45 = vld [vmem:[%s4912_s1 + $0xd48] sm:$0xff] }
 0x104   :  { %2417 = vmatprep.subr.bf16.mxu1 %v2416_v41  ;;  %v2298_v34 = vpack.c.bf16 %v439_v32, %v433_v31  ;;  %v2569_v41 = vld [vmem:[%s4913_s0 + $0x28] sm:$0xff]  ;;  %v547_v24 = vld [vmem:[%s4912_s1 + $0x1018] sm:$0xff] }
 0x105   :  { %2241 = vmatpush1.bf16.msra.mxu0 %v2240_v53  ;;  %v355_v53 = vld [vmem:[%s4912_s1 + $0xa18] sm:$0xff] }
 0x106   :  { %2243 = vmatprep.subr.bf16.mxu0 %v2242_v56  ;;  %v2270_v55 = vpack.c.bf16 %v355_v53, %v349_v52  ;;  %v348_v56 = vld [vmem:[%s4912_s1 + $0x9e0] sm:$0xff]  ;;  %v475_v52 = vld [vmem:[%s4912_s1 + $0xdd8] sm:$0xff] }
 0x107   :  { %v2272_v60 = vpack.c.bf16 %v354_v57, %v348_v56  ;;  %v474_v56 = vld [vmem:[%s4912_s1 + $0xdd0] sm:$0xff]  ;;  %v481_v57 = vld [vmem:[%s4912_s1 + $0xe08] sm:$0xff]  ;;  %v559_v31 = vld [vmem:[%s4912_s1 + $0x1078] sm:$0xff] }
 0x109   :  { %2245 = vmatpush1.bf16.msra.mxu0 %v2244_v1  ;;  %v379_v1 = vld [vmem:[%s4912_s1 + $0xad8] sm:$0xff] }
 0x10a   :  { %2247 = vmatprep.subr.bf16.mxu0 %v2246_v4  ;;  %v2278_v3 = vpack.c.bf16 %v379_v1, %v373_v0  ;;  %v372_v4 = vld [vmem:[%s4912_s1 + $0xaa0] sm:$0xff]  ;;  %v499_v0 = vld [vmem:[%s4912_s1 + $0xe98] sm:$0xff] }
 0x10b   :  { %v2280_v8 = vpack.c.bf16 %v378_v5, %v372_v4  ;;  %v498_v4 = vld [vmem:[%s4912_s1 + $0xe90] sm:$0xff]  ;;  %v505_v5 = vld [vmem:[%s4912_s1 + $0xec8] sm:$0xff] }
 0x10d   :  { %2249 = vmatpush1.bf16.msra.mxu0 %v2248_v13  ;;  %v403_v13 = vld [vmem:[%s4912_s1 + $0xb98] sm:$0xff] }
 0x10e   :  { %2251 = vmatprep.subr.bf16.mxu0 %v2250_v14  ;;  %v2284_v14 = vpack.c.bf16 %v390_v11, %v384_v10  ;;  %v2286_v15 = vpack.c.bf16 %v403_v13, %v397_v12  ;;  %v510_v10 = vld [vmem:[%s4912_s1 + $0xef0] sm:$0xff]  ;;  %v517_v11 = vld [vmem:[%s4912_s1 + $0xf28] sm:$0xff]  ;;  %v523_v12 = vld [vmem:[%s4912_s1 + $0xf58] sm:$0xff] }
 0x111   :  { %2253 = vmatpush1.bf16.msra.mxu0 %v2252_v20  ;;  %v2288_v20 = vpack.c.bf16 %v402_v17, %v396_v16  ;;  %v522_v16 = vld [vmem:[%s4912_s1 + $0xf50] sm:$0xff]  ;;  %v529_v17 = vld [vmem:[%s4912_s1 + $0xf88] sm:$0xff] }
 0x112   :  { %2255 = vmatprep.subr.bf16.mxu0 %v2254_v23  ;;  %v414_v23 = vld [vmem:[%s4912_s1 + $0xbf0] sm:$0xff] }
 0x113   :  { %v2292_v26 = vpack.c.bf16 %v414_v23, %v408_v22  ;;  %v534_v22 = vld [vmem:[%s4912_s1 + $0xfb0] sm:$0xff]  ;;  %v541_v23 = vld [vmem:[%s4912_s1 + $0xfe8] sm:$0xff] }
 0x115   :  { %2257 = vmatpush1.bf16.msra.mxu0 %v2256_v33  ;;  %v2296_v33 = vpack.c.bf16 %v426_v30, %v420_v29  ;;  %v546_v29 = vld [vmem:[%s4912_s1 + $0x1010] sm:$0xff]  ;;  %v553_v30 = vld [vmem:[%s4912_s1 + $0x1048] sm:$0xff] }
 0x116   :  { %2259 = vmatprep.subr.bf16.mxu0 %v2258_v35  ;;  %v432_v35 = vld [vmem:[%s4912_s1 + $0xc80] sm:$0xff] }
 0x117   :  { %v2300_v40 = vpack.c.bf16 %v438_v36, %v432_v35  ;;  %v558_v35 = vld [vmem:[%s4912_s1 + $0x1070] sm:$0xff]  ;;  %v565_v36 = vld [vmem:[%s4912_s1 + $0x10a8] sm:$0xff] }
 0x119   :  { %2261 = vmatpush1.bf16.msra.mxu0 %v2260_v42  ;;  %v2302_v42 = vpack.c.bf16 %v451_v38, %v445_v37  ;;  %v571_v37 = vld [vmem:[%s4912_s1 + $0x10d8] sm:$0xff] }
 0x11a   :  { %2263 = vmatprep.subr.bf16.mxu0 %v2262_v43  ;;  %v444_v43 = vld [vmem:[%s4912_s1 + $0xce0] sm:$0xff] }
 0x11b   :  { %v2304_v47 = vpack.c.bf16 %v450_v44, %v444_v43  ;;  %v583_v43 = vld [vmem:[%s4912_s1 + $0x1138] sm:$0x1] }
 0x11d   :  { %2265 = vmatpush1.bf16.msra.mxu0 %v2264_v48  ;;  %v2306_v48 = vpack.c.bf16 %v463_v46, %v457_v45  ;;  %v576_v46 = vld [vmem:[%s4912_s1 + $0x1100] sm:$0xff] }
 0x11e   :  { %2267 = vmatprep.subr.bf16.mxu0 %v2266_v49  ;;  %v456_v49 = vld [vmem:[%s4912_s1 + $0xd40] sm:$0xff] }
 0x11f   :  { %v2308_v53 = vpack.c.bf16 %v462_v50, %v456_v49  ;;  %v2570_v49 = vld [vmem:[%s4913_s0 + $0x20] sm:$0xff]  ;;  %v586_v50 = vlaneseq }
 0x121   :  { %2269 = vmatpush1.bf16.msra.mxu0 %v2268_v54  ;;  %v2310_v54 = vpack.c.bf16 %v475_v52, %v469_v51  ;;  %v4531_v51 = vshrl.u32 %v586_v50, 7  ;;  %v1383_v50 = vld [vmem:[%s4914_s3 + $0x318] sm:$0xff] }
 0x122   :  { %2271 = vmatprep.subr.bf16.mxu0 %v2270_v55  ;;  %v468_v55 = vld [vmem:[%s4912_s1 + $0xda0] sm:$0xff] }
 0x123   :  { %v2312_v59 = vpack.c.bf16 %v474_v56, %v468_v55  ;;  %v588_v52 = vsub.s32 0, %v4531_v51 }
 0x125   :  { %2273 = vmatpush1.bf16.msra.mxu0 %v2272_v60  ;;  %v2314_v60 = vpack.c.bf16 %v487_v58, %v481_v57 }
 0x126   :  { %2275 = vmatprep.subr.bf16.mxu0 %v2274_v61  ;;  %v480_v61 = vld [vmem:[%s4912_s1 + $0xe00] sm:$0xff] }
 0x127   :  { %v2316_v1 = vpack.c.bf16 %v486_v62, %v480_v61  ;;  %v1353_v62 = vld [vmem:[%s4914_s3 + $0x228] sm:$0xff] }
 0x129   :  { %2277 = vmatpush1.bf16.msra.mxu0 %v2276_v2  ;;  %v2318_v2 = vpack.c.bf16 %v499_v0, %v493_v63  ;;  %v1355_v63 = vld [vmem:[%s4914_s3 + $0x238] sm:$0xff] }
 0x12a   :  { %2279 = vmatprep.subr.bf16.mxu0 %v2278_v3  ;;  %v492_v3 = vld [vmem:[%s4912_s1 + $0xe60] sm:$0xff] }
 0x12b   :  { %v2320_v7 = vpack.c.bf16 %v498_v4, %v492_v3  ;;  %v2420_v3 = vpack.c.bf16 %v1355_v63, %v1353_v62  ;;  %v1352_v4 = vld [vmem:[%s4914_s3 + $0x220] sm:$0xff]  ;;  %v1386_v63 = vld [vmem:[%s4914_s3 + $0x330] sm:$0xff] }
 0x12c   :  { %v1384_v62 = vld [vmem:[%s4914_s3 + $0x320] sm:$0xff] }
 0x12d   :  { %2281 = vmatpush1.bf16.msra.mxu0 %v2280_v8  ;;  %v2322_v8 = vpack.c.bf16 %v511_v6, %v505_v5  ;;  %v1354_v5 = vld [vmem:[%s4914_s3 + $0x230] sm:$0xff]  ;;  %v600_v6 = vsub.s32 3, %v4531_v51 }
 0x12e   :  { %2283 = vmatprep.subr.bf16.mxu0 %v2282_v9  ;;  %v504_v9 = vld [vmem:[%s4912_s1 + $0xec0] sm:$0xff] }
 0x12f   :  { %v2324_v13 = vpack.c.bf16 %v510_v10, %v504_v9  ;;  %v2422_v9 = vpack.c.bf16 %v1354_v5, %v1352_v4  ;;  %v1388_v4 = vld [vmem:[%s4914_s3 + $0x340] sm:$0xff]  ;;  %v1390_v5 = vld [vmem:[%s4914_s3 + $0x350] sm:$0xff] }
 0x131   :  { %2285 = vmatpush1.bf16.msra.mxu0 %v2284_v14  ;;  %v2326_v14 = vpack.c.bf16 %v523_v12, %v517_v11  ;;  %v1356_v11 = vld [vmem:[%s4914_s3 + $0x240] sm:$0xff]  ;;  %v1358_v12 = vld [vmem:[%s4914_s3 + $0x250] sm:$0xff] }
 0x132   :  { %2287 = vmatprep.subr.bf16.mxu0 %v2286_v15  ;;  %v516_v15 = vld [vmem:[%s4912_s1 + $0xf20] sm:$0xff] }
 0x133   :  { %v2328_v19 = vpack.c.bf16 %v522_v16, %v516_v15  ;;  %v1363_v15 = vld [vmem:[%s4914_s3 + $0x278] sm:$0xff] }
 0x135   :  { %2289 = vmatpush1.bf16.msra.mxu0 %v2288_v20  ;;  %v2330_v20 = vpack.c.bf16 %v535_v18, %v529_v17  ;;  %v2426_v17 = vpack.c.bf16 %v1358_v12, %v1356_v11  ;;  %v1394_v11 = vld [vmem:[%s4914_s3 + $0x370] sm:$0xff]  ;;  %v1397_v12 = vld [vmem:[%s4914_s3 + $0x388] sm:$0xff] }
 0x136   :  { %2291 = vmatprep.subr.bf16.mxu0 %v2290_v21  ;;  %v528_v21 = vld [vmem:[%s4912_s1 + $0xf80] sm:$0xff] }
 0x137   :  { %v2332_v25 = vpack.c.bf16 %v534_v22, %v528_v21  ;;  %v1362_v21 = vld [vmem:[%s4914_s3 + $0x270] sm:$0xff] }
 0x139   :  { %2293 = vmatpush1.bf16.msra.mxu0 %v2292_v26  ;;  %v2334_v26 = vpack.c.bf16 %v547_v24, %v541_v23  ;;  %v1365_v23 = vld [vmem:[%s4914_s3 + $0x288] sm:$0xff]  ;;  %v1367_v24 = vld [vmem:[%s4914_s3 + $0x298] sm:$0xff] }
 0x13a   :  { %2295 = vmatprep.subr.bf16.mxu0 %v2294_v28  ;;  %v540_v28 = vld [vmem:[%s4912_s1 + $0xfe0] sm:$0xff] }
 0x13b   :  { %v2336_v32 = vpack.c.bf16 %v546_v29, %v540_v28  ;;  %v2432_v28 = vpack.c.bf16 %v1367_v24, %v1365_v23  ;;  %v1364_v29 = vld [vmem:[%s4914_s3 + $0x280] sm:$0xff]  ;;  %v1402_v24 = vld [vmem:[%s4914_s3 + $0x3b0] sm:$0xff] }
 0x13c   :  { %1201 = vmatmul.mubr.f32.vlgmr.msra.gmra.mrb[2].mxu0 %v2568_v39  ;;  %v2342_v39 = vpack.c.bf16 %v571_v37, %v565_v36  ;;  %v1370_v36 = vld [vmem:[%s4914_s3 + $0x2b0] sm:$0xff]  ;;  %v1373_v37 = vld [vmem:[%s4914_s3 + $0x2c8] sm:$0xff]  ;;  %v1400_v23 = vld [vmem:[%s4914_s3 + $0x3a0] sm:$0xff] }
 0x13d   :  { %2297 = vmatpush1.bf16.msra.mxu0 %v2296_v33  ;;  %1790 = vmatprep.mubr.msk.f32.mxu0 %vm616_vm0, %v2569_v41  ;;  %v2338_v33 = vpack.c.bf16 %v559_v31, %v553_v30  ;;  %v570_v41 = vld [vmem:[%s4912_s1 + $0x10d0] sm:$0xff]  ;;  %v1369_v31 = vld [vmem:[%s4914_s3 + $0x2a8] sm:$0xff] }
 0x13e   :  { %2299 = vmatprep.subr.bf16.mxu0 %v2298_v34  ;;  %v552_v34 = vld [vmem:[%s4912_s1 + $0x1040] sm:$0xff]  ;;  %v1366_v30 = vld [vmem:[%s4914_s3 + $0x290] sm:$0xff] }
 0x13f   :  { %v2340_v38 = vpack.c.bf16 %v558_v35, %v552_v34  ;;  %v1368_v35 = vld [vmem:[%s4914_s3 + $0x2a0] sm:$0xff] }
 0x141   :  { %2301 = vmatpush1.bf16.msra.mxu0 %v2300_v40  ;;  %v564_v40 = vld [vmem:[%s4912_s1 + $0x10a0] sm:$0xff] }
 0x142   :  { %2303 = vmatprep.subr.bf16.mxu0 %v2302_v42  ;;  %v577_v42 = vld [vmem:[%s4912_s1 + $0x1108] sm:$0xff]  ;;  %v2344_v44 = vpack.c.bf16 %v570_v41, %v564_v40  ;;  %v1372_v41 = vld [vmem:[%s4914_s3 + $0x2c0] sm:$0xff] }
 0x143   :  { %v2346_v45 = vpack.c.bf16 %v583_v43, %v577_v42  ;;  %v1374_v42 = vld [vmem:[%s4914_s3 + $0x2d0] sm:$0xff]  ;;  %v1377_v43 = vld [vmem:[%s4914_s3 + $0x2e8] sm:$0xff] }
 0x145   :  { %2305 = vmatpush1.bf16.msra.mxu0 %v2304_v47  ;;  %v582_v47 = vld [vmem:[%s4912_s1 + $0x1130] sm:$0x1] }
 0x146   :  { %2307 = vmatprep.subr.bf16.mxu0 %v2306_v48  ;;  %v2349_v48 = vpack.c.bf16 %v582_v47, %v576_v46  ;;  %v1376_v47 = vld [vmem:[%s4914_s3 + $0x2e0] sm:$0xff] }
 0x149   :  { %2309 = vmatpush1.bf16.msra.mxu0 %v2308_v53  ;;  %v4537_v53 = vld [vmem:[%s4915_s2] sm:$0x3f] }
 0x14a   :  { %2311 = vmatprep.subr.bf16.mxu0 %v2310_v54  ;;  %v592_v54 = vsub.s32 1, %v4531_v51  ;;  %v589_v27 = vrot.slane %v4537_v53, %v588_v52 }
 0x14c   :  { %v593_v55 = vrot.slane %v4537_v53, %v592_v54 }
 0x14d   :  { %2313 = vmatpush1.bf16.msra.mxu0 %v2312_v59  ;;  %v1348_v59 = vld [vmem:[%s4914_s3 + $0x200] sm:$0xff] }
 0x14e   :  { %2315 = vmatprep.subr.bf16.mxu0 %v2314_v60  ;;  %v1350_v60 = vld [vmem:[%s4914_s3 + $0x210] sm:$0xff] }
 0x151   :  { %2317 = vmatpush1.bf16.msra.mxu0 %v2316_v1  ;;  %v2418_v1 = vpack.c.bf16 %v1350_v60, %v1348_v59  ;;  %v1387_v59 = vld [vmem:[%s4914_s3 + $0x338] sm:$0xff] }
 0x152   :  { %2319 = vmatprep.subr.bf16.mxu0 %v2318_v2 }
 0x155   :  { %2321 = vmatpush1.bf16.msra.mxu0 %v2320_v7  ;;  %v1357_v7 = vld [vmem:[%s4914_s3 + $0x248] sm:$0xff] }
 0x156   :  { %2323 = vmatprep.subr.bf16.mxu0 %v2322_v8  ;;  %v1359_v8 = vld [vmem:[%s4914_s3 + $0x258] sm:$0xff] }
 0x157   :  { %v2424_v10 = vpack.c.bf16 %v1359_v8, %v1357_v7  ;;  %v1395_v7 = vld [vmem:[%s4914_s3 + $0x378] sm:$0xff]  ;;  %v2458_v8 = vpack.c.bf16 %v1390_v5, %v1388_v4  ;;  %v1429_v4 = vld [vmem:[%s4914_s3 + $0x488] sm:$0xff] }
 0x158   :  { %v1431_v5 = vld [vmem:[%s4914_s3 + $0x498] sm:$0xff] }
 0x159   :  { %2325 = vmatpush1.bf16.msra.mxu0 %v2324_v13  ;;  %v601_v13 = vrot.slane %v4537_v53, %v600_v6  ;;  %v1393_v6 = vld [vmem:[%s4914_s3 + $0x368] sm:$0xff] }
 0x15a   :  { %2327 = vmatprep.subr.bf16.mxu0 %v2326_v14  ;;  %v1361_v14 = vld [vmem:[%s4914_s3 + $0x268] sm:$0xff] }
 0x15d   :  { %2329 = vmatpush1.bf16.msra.mxu0 %v2328_v19  ;;  %v2428_v19 = vpack.c.bf16 %v1363_v15, %v1361_v14 }
 0x15e   :  { %2331 = vmatprep.subr.bf16.mxu0 %v2330_v20  ;;  %v1360_v20 = vld [vmem:[%s4914_s3 + $0x260] sm:$0xff] }
 0x161   :  { %2333 = vmatpush1.bf16.msra.mxu0 %v2332_v25 }
 0x162   :  { %2335 = vmatprep.subr.bf16.mxu0 %v2334_v26  ;;  %v2430_v26 = vpack.c.bf16 %v1362_v21, %v1360_v20  ;;  %v1403_v20 = vld [vmem:[%s4914_s3 + $0x3b8] sm:$0xff] }
 0x165   :  { %2337 = vmatpush1.bf16.msra.mxu0 %v2336_v32  ;;  %v1371_v32 = vld [vmem:[%s4914_s3 + $0x2b8] sm:$0xff] }
 0x166   :  { %2339 = vmatprep.subr.bf16.mxu0 %v2338_v33  ;;  %v2434_v33 = vpack.c.bf16 %v1366_v30, %v1364_v29  ;;  %v2436_v34 = vpack.c.bf16 %v1371_v32, %v1369_v31  ;;  %v596_v29 = vsub.s32 2, %v4531_v51  ;;  %v1404_v31 = vld [vmem:[%s4914_s3 + $0x3c0] sm:$0xff]  ;;  %v1406_v32 = vld [vmem:[%s4914_s3 + $0x3d0] sm:$0xff] }
 0x169   :  { %2341 = vmatpush1.bf16.msra.mxu0 %v2340_v38  ;;  %v1375_v38 = vld [vmem:[%s4914_s3 + $0x2d8] sm:$0xff] }
 0x16a   :  { %2343 = vmatprep.subr.bf16.mxu0 %v2342_v39  ;;  %v2438_v39 = vpack.c.bf16 %v1370_v36, %v1368_v35  ;;  %v2440_v40 = vpack.c.bf16 %v1375_v38, %v1373_v37  ;;  %v2474_v35 = vpack.c.bf16 %v1406_v32, %v1404_v31  ;;  %v597_v36 = vrot.slane %v4537_v53, %v596_v29  ;;  %v1408_v38 = vld [vmem:[%s4914_s3 + $0x3e0] sm:$0xff]  ;;  %v1442_v29 = vld [vmem:[%s4914_s3 + $0x4f0] sm:$0xff]  ;;  %v1445_v31 = vld [vmem:[%s4914_s3 + $0x508] sm:$0xff] }
 0x16b   :  { %v1444_v32 = vld [vmem:[%s4914_s3 + $0x500] sm:$0xff] }
 0x16d   :  { %2345 = vmatpush1.bf16.msra.mxu0 %v2344_v44  ;;  %v1379_v44 = vld [vmem:[%s4914_s3 + $0x2f8] sm:$0xff] }
 0x16e   :  { %2348 = vmatprep.subr.msk.bf16.mxu0 %vm3713_vm3, %v2346_v45  ;;  %v2442_v45 = vpack.c.bf16 %v1374_v42, %v1372_v41  ;;  %v2444_v46 = vpack.c.bf16 %v1379_v44, %v1377_v43  ;;  %v1415_v41 = vld [vmem:[%s4914_s3 + $0x418] sm:$0xff] }
 0x171   :  { %2351 = vmatpush1.bf16.msk.msra.mxu0 %vm3713_vm3, %v2349_v48  ;;  %v1378_v48 = vld [vmem:[%s4914_s3 + $0x2f0] sm:$0xff] }
 0x174   :  { %1272 = vmatmul.mubr.f32.vlgmr.msra.gmra.mrb[2].mxu0 %v2570_v49  ;;  %v1381_v49 = vld [vmem:[%s4914_s3 + $0x308] sm:$0xff] }
 0x18f   :  { %v847_v56 = vpop.f32.mrb[0].mxu0 }
 0x190   :  { %v2539_v57 = vadd.f32 %v847_v56, %v589_v27  ;;  %v849_v58 = vpop.f32.mrb[1].mxu0  ;;  %v2446_v27 = vpack.c.bf16 %v1378_v48, %v1376_v47  ;;  %v1380_v56 = vld [vmem:[%s4914_s3 + $0x300] sm:$0xff]  ;;  %v1417_v47 = vld [vmem:[%s4914_s3 + $0x428] sm:$0xff]  ;;  %v1419_v48 = vld [vmem:[%s4914_s3 + $0x438] sm:$0xff] }
 0x191   :  { %v2540_v61 = vadd.f32 %v849_v58, %v593_v55  ;;  %v2448_v55 = vpack.c.bf16 %v1383_v50, %v1381_v49  ;;  %v1385_v58 = vld [vmem:[%s4914_s3 + $0x328] sm:$0xff]  ;;  %v2484_v50 = vpack.c.bf16 %v1419_v48, %v1417_v47  ;;  %v1680_v47 = vld [vmem:[%s4916_s5 + $0x18] sm:$0xff] }
 0x192   :  { %v1278_v2 = vmax.f32 %v2539_v57, 0.0  ;;  %v1382_v57 = vld [vmem:[%s4914_s3 + $0x310] sm:$0xff] }
 0x193   :  { %v1279_v0 = vmax.f32 %v2540_v61, 0.0  ;;  %v2450_v60 = vpack.c.bf16 %v1382_v57, %v1380_v56  ;;  %v2452_v61 = vpack.c.bf16 %v1387_v59, %v1385_v58  ;;  %v1421_v56 = vld [vmem:[%s4914_s3 + $0x448] sm:$0xff]  ;;  %v1423_v57 = vld [vmem:[%s4914_s3 + $0x458] sm:$0xff] }
 0x194   :  { %v2488_v59 = vpack.c.bf16 %v1423_v57, %v1421_v56  ;;  %v1685_v57 = vld [vmem:[%s4916_s5 + $0x40] sm:$0xff] }
 0x195   :  { %1526 = vmatprep.mubr.f32.mxu1 %v1279_v0  ;;  %v4584_v16 = vpop.f32.mrb[0].mxu1  ;;  %v1389_v0 = vld [vmem:[%s4914_s3 + $0x348] sm:$0xff] }
 0x196   :  { %1527 = vmatmul.mubr.f32.vlgmr.msra.gmra.mrb[2].mxu1 %v1278_v2  ;;  %v1062_v18 = vpop.f32.mrb[1].mxu1  ;;  %v2454_v2 = vpack.c.bf16 %v1386_v63, %v1384_v62  ;;  %v2541_v43 = vadd.f32 %v4584_v16, %v597_v36  ;;  %v1425_v62 = vld [vmem:[%s4914_s3 + $0x468] sm:$0xff]  ;;  %v1427_v63 = vld [vmem:[%s4914_s3 + $0x478] sm:$0xff] }
 0x197   :  { %2419 = vmatpush1.bf16.msra.mxu1 %v2418_v1  ;;  %v2542_v22 = vadd.f32 %v1062_v18, %v601_v13  ;;  %v1391_v1 = vld [vmem:[%s4914_s3 + $0x358] sm:$0xff]  ;;  %v1398_v18 = vld [vmem:[%s4914_s3 + $0x390] sm:$0xff] }
 0x198   :  { %2421 = vmatprep.subr.bf16.mxu1 %v2420_v3  ;;  %v2456_v3 = vpack.c.bf16 %v1391_v1, %v1389_v0  ;;  %v1399_v13 = vld [vmem:[%s4914_s3 + $0x398] sm:$0xff]  ;;  %v1280_v49 = vmax.f32 %v2541_v43, 0.0  ;;  %v2492_v1 = vpack.c.bf16 %v1427_v63, %v1425_v62  ;;  %v1689_v63 = vld [vmem:[%s4916_s5 + $0x60] sm:$0xff] }
 0x199   :  { %v1281_v25 = vmax.f32 %v2542_v22, 0.0  ;;  %v2464_v15 = vpack.c.bf16 %v1399_v13, %v1397_v12 }
 0x19b   :  { %2423 = vmatpush1.bf16.msra.mxu1 %v2422_v9  ;;  %1597 = vmatprep.mubr.f32.mxu1 %v1281_v25  ;;  %v2460_v9 = vpack.c.bf16 %v1395_v7, %v1393_v6  ;;  %v1405_v25 = vld [vmem:[%s4914_s3 + $0x3c8] sm:$0xff]  ;;  %v2496_v7 = vpack.c.bf16 %v1431_v5, %v1429_v4  ;;  %v1693_v5 = vld [vmem:[%s4916_s5 + $0x80] sm:$0xff] }
 0x19c   :  { %2425 = vmatprep.subr.bf16.mxu1 %v2424_v10  ;;  %v1392_v10 = vld [vmem:[%s4914_s3 + $0x360] sm:$0xff] }
 0x19d   :  { %v2462_v14 = vpack.c.bf16 %v1394_v11, %v1392_v10  ;;  %v1433_v10 = vld [vmem:[%s4914_s3 + $0x4a8] sm:$0xff]  ;;  %v1435_v11 = vld [vmem:[%s4914_s3 + $0x4b8] sm:$0xff] }
 0x19e   :  { %v2500_v13 = vpack.c.bf16 %v1435_v11, %v1433_v10 }
 0x19f   :  { %2427 = vmatpush1.bf16.msra.mxu1 %v2426_v17  ;;  %v1396_v17 = vld [vmem:[%s4914_s3 + $0x380] sm:$0xff] }
 0x1a0   :  { %2429 = vmatprep.subr.bf16.mxu1 %v2428_v19  ;;  %v1401_v19 = vld [vmem:[%s4914_s3 + $0x3a8] sm:$0xff]  ;;  %v2466_v21 = vpack.c.bf16 %v1398_v18, %v1396_v17  ;;  %v1439_v18 = vld [vmem:[%s4914_s3 + $0x4d8] sm:$0xff] }
 0x1a1   :  { %v2468_v22 = vpack.c.bf16 %v1403_v20, %v1401_v19  ;;  %v1437_v17 = vld [vmem:[%s4914_s3 + $0x4c8] sm:$0xff] }
 0x1a2   :  { %v2504_v20 = vpack.c.bf16 %v1439_v18, %v1437_v17  ;;  %v1792_v18 = vld [vmem:[%s4918_s6] ss:$0 sm:$0xff] }
 0x1a3   :  { %2431 = vmatpush1.bf16.msra.mxu1 %v2430_v26  ;;  %v1407_v26 = vld [vmem:[%s4914_s3 + $0x3d8] sm:$0xff] }
 0x1a4   :  { %2433 = vmatprep.subr.bf16.mxu1 %v2432_v28  ;;  %v2470_v28 = vpack.c.bf16 %v1402_v24, %v1400_v23  ;;  %v2472_v30 = vpack.c.bf16 %v1407_v26, %v1405_v25  ;;  %v1441_v23 = vld [vmem:[%s4914_s3 + $0x4e8] sm:$0xff]  ;;  %v1443_v24 = vld [vmem:[%s4914_s3 + $0x4f8] sm:$0xff] }
 0x1a5   :  { %v2508_v26 = vpack.c.bf16 %v1443_v24, %v1441_v23 }
 0x1a7   :  { %2435 = vmatpush1.bf16.msra.mxu1 %v2434_v33  ;;  %v1409_v33 = vld [vmem:[%s4914_s3 + $0x3e8] sm:$0xff] }
 0x1a8   :  { %2437 = vmatprep.subr.bf16.mxu1 %v2436_v34  ;;  %v1411_v34 = vld [vmem:[%s4914_s3 + $0x3f8] sm:$0xff] }
 0x1a9   :  { %v2476_v37 = vpack.c.bf16 %v1411_v34, %v1409_v33  ;;  %v2572_v33 = vmov 0.0|0.0   ;;  %v604_v34 = vsub.s32 4, %v4531_v51 }
 0x1ab   :  { %2439 = vmatpush1.bf16.msra.mxu1 %v2438_v39  ;;  %v1410_v39 = vld [vmem:[%s4914_s3 + $0x3f0] sm:$0xff]  ;;  %v605_v36 = vrot.slane %v4537_v53, %v604_v34 }
 0x1ac   :  { %2441 = vmatprep.subr.bf16.mxu1 %v2440_v40  ;;  %v1413_v40 = vld [vmem:[%s4914_s3 + $0x408] sm:$0xff]  ;;  %v2478_v42 = vpack.c.bf16 %v1410_v39, %v1408_v38 }
 0x1ad   :  { %v2480_v44 = vpack.c.bf16 %v1415_v41, %v1413_v40  ;;  %v1677_v41 = vld [vmem:[%s4916_s5] sm:$0xff] }
 0x1af   :  { %2443 = vmatpush1.bf16.msra.mxu1 %v2442_v45  ;;  %v1412_v45 = vld [vmem:[%s4914_s3 + $0x400] sm:$0xff] }
 0x1b0   :  { %2445 = vmatprep.subr.bf16.mxu1 %v2444_v46  ;;  %v1414_v46 = vld [vmem:[%s4914_s3 + $0x410] sm:$0xff] }
 0x1b1   :  { %v2482_v16 = vpack.c.bf16 %v1414_v46, %v1412_v45 }
 0x1b3   :  { %2447 = vmatpush1.bf16.msra.mxu1 %v2446_v27  ;;  %v1416_v27 = vld [vmem:[%s4914_s3 + $0x420] sm:$0xff] }
 0x1b4   :  { %2449 = vmatprep.subr.bf16.mxu1 %v2448_v55  ;;  %v1418_v55 = vld [vmem:[%s4914_s3 + $0x430] sm:$0xff] }
 0x1b5   :  { %v2486_v58 = vpack.c.bf16 %v1418_v55, %v1416_v27  ;;  %v1683_v27 = vld [vmem:[%s4916_s5 + $0x30] sm:$0xff]  ;;  %v1684_v55 = vld [vmem:[%s4916_s5 + $0x38] sm:$0xff] }
 0x1b6   :  { %v2522_v56 = vpack.c.bf16 %v1684_v55, %v1683_v27 }
 0x1b7   :  { %2451 = vmatpush1.bf16.msra.mxu1 %v2450_v60  ;;  %v1420_v60 = vld [vmem:[%s4914_s3 + $0x440] sm:$0xff] }
 0x1b8   :  { %2453 = vmatprep.subr.bf16.mxu1 %v2452_v61  ;;  %v1422_v61 = vld [vmem:[%s4914_s3 + $0x450] sm:$0xff] }
 0x1b9   :  { %v2490_v0 = vpack.c.bf16 %v1422_v61, %v1420_v60  ;;  %v1687_v60 = vld [vmem:[%s4916_s5 + $0x50] sm:$0xff]  ;;  %v1688_v61 = vld [vmem:[%s4916_s5 + $0x58] sm:$0xff] }
 0x1ba   :  { %v2528_v62 = vpack.c.bf16 %v1688_v61, %v1687_v60 }
 0x1bb   :  { %2455 = vmatpush1.bf16.msra.mxu1 %v2454_v2  ;;  %v1424_v2 = vld [vmem:[%s4914_s3 + $0x460] sm:$0xff] }
 0x1bc   :  { %2457 = vmatprep.subr.bf16.mxu1 %v2456_v3  ;;  %v1426_v3 = vld [vmem:[%s4914_s3 + $0x470] sm:$0xff] }
 0x1bd   :  { %v2494_v6 = vpack.c.bf16 %v1426_v3, %v1424_v2  ;;  %v1691_v2 = vld [vmem:[%s4916_s5 + $0x70] sm:$0xff]  ;;  %v1692_v3 = vld [vmem:[%s4916_s5 + $0x78] sm:$0xff] }
 0x1be   :  { %v2534_v4 = vpack.c.bf16 %v1692_v3, %v1691_v2 }
 0x1bf   :  { %2459 = vmatpush1.bf16.msra.mxu1 %v2458_v8  ;;  %v1428_v8 = vld [vmem:[%s4914_s3 + $0x480] sm:$0xff] }
 0x1c0   :  { %2461 = vmatprep.subr.bf16.mxu1 %v2460_v9  ;;  %v1430_v9 = vld [vmem:[%s4914_s3 + $0x490] sm:$0xff] }
 0x1c1   :  { %v2498_v12 = vpack.c.bf16 %v1430_v9, %v1428_v8  ;;  %v1446_v8 = vld [vmem:[%s4917_s4] sm:$0x3] }
 0x1c2   :  { %v1451_v9 = vrot.slane %v1446_v8, %v588_v52  ;;  %v1455_v10 = vrot.slane %v1446_v8, %v592_v54 }
 0x1c3   :  { %2463 = vmatpush1.bf16.msra.mxu1 %v2462_v14  ;;  %v1432_v14 = vld [vmem:[%s4914_s3 + $0x4a0] sm:$0xff] }
 0x1c4   :  { %2465 = vmatprep.subr.bf16.mxu1 %v2464_v15  ;;  %v1434_v15 = vld [vmem:[%s4914_s3 + $0x4b0] sm:$0xff] }
 0x1c5   :  { %v2502_v19 = vpack.c.bf16 %v1434_v15, %v1432_v14 }
 0x1c7   :  { %2467 = vmatpush1.bf16.msra.mxu1 %v2466_v21  ;;  %v1436_v21 = vld [vmem:[%s4914_s3 + $0x4c0] sm:$0xff] }
 0x1c8   :  { %2469 = vmatprep.subr.bf16.mxu1 %v2468_v22  ;;  %v1438_v22 = vld [vmem:[%s4914_s3 + $0x4d0] sm:$0xff] }
 0x1c9   :  { %v2506_v25 = vpack.c.bf16 %v1438_v22, %v1436_v21 }
 0x1cb   :  { %2471 = vmatpush1.bf16.msra.mxu1 %v2470_v28  ;;  %v1440_v28 = vld [vmem:[%s4914_s3 + $0x4e0] sm:$0xff] }
 0x1cc   :  { %2473 = vmatprep.subr.bf16.mxu1 %v2472_v30  ;;  %v2510_v30 = vpack.c.bf16 %v1442_v29, %v1440_v28 }
 0x1cf   :  { %2475 = vmatpush1.bf16.msra.mxu1 %v2474_v35  ;;  %v608_v35 = vsub.s32 5, %v4531_v51 }
 0x1d0   :  { %2477 = vmatprep.subr.bf16.mxu1 %v2476_v37 }
 0x1d1   :  { %v609_v37 = vrot.slane %v4537_v53, %v608_v35  ;;  %v1679_v53 = vld [vmem:[%s4916_s5 + $0x10] sm:$0xff] }
 0x1d2   :  { %v2516_v48 = vpack.c.bf16 %v1680_v47, %v1679_v53 }
 0x1d3   :  { %2479 = vmatpush1.bf16.msra.mxu1 %v2478_v42  ;;  %v1678_v42 = vld [vmem:[%s4916_s5 + $0x8] sm:$0xff] }
 0x1d4   :  { %2481 = vmatprep.subr.bf16.mxu1 %v2480_v44  ;;  %v2513_v45 = vpack.c.bf16 %v1678_v42, %v1677_v41 }
 0x1d6   :  { %1598 = vmatmul.mubr.f32.vlgmr.msra.gmra.mrb[2].mxu1 %v1280_v49  ;;  %v1682_v49 = vld [vmem:[%s4916_s5 + $0x28] sm:$0xff] }
 0x1d7   :  { %2483 = vmatpush1.bf16.msra.mxu1 %v2482_v16  ;;  %v1681_v16 = vld [vmem:[%s4916_s5 + $0x20] sm:$0xff] }
 0x1d8   :  { %2485 = vmatprep.subr.bf16.mxu1 %v2484_v50  ;;  %v2519_v50 = vpack.c.bf16 %v1682_v49, %v1681_v16 }
 0x1db   :  { %2487 = vmatpush1.bf16.msra.mxu1 %v2486_v58  ;;  %v1686_v58 = vld [vmem:[%s4916_s5 + $0x48] sm:$0xff] }
 0x1dc   :  { %2489 = vmatprep.subr.bf16.mxu1 %v2488_v59  ;;  %v2525_v59 = vpack.c.bf16 %v1686_v58, %v1685_v57 }
 0x1df   :  { %2491 = vmatpush1.bf16.msra.mxu1 %v2490_v0  ;;  %v1690_v0 = vld [vmem:[%s4916_s5 + $0x68] sm:$0xff] }
 0x1e0   :  { %2493 = vmatprep.subr.bf16.mxu1 %v2492_v1  ;;  %v2531_v1 = vpack.c.bf16 %v1690_v0, %v1689_v63 }
 0x1e3   :  { %2495 = vmatpush1.bf16.msra.mxu1 %v2494_v6  ;;  %v1694_v6 = vld [vmem:[%s4916_s5 + $0x88] sm:$0xff] }
 0x1e4   :  { %2497 = vmatprep.subr.bf16.mxu1 %v2496_v7  ;;  %v2537_v7 = vpack.c.bf16 %v1694_v6, %v1693_v5 }
 0x1e7   :  { %2499 = vmatpush1.bf16.msra.mxu1 %v2498_v12 }
 0x1e8   :  { %2501 = vmatprep.subr.bf16.mxu1 %v2500_v13 }
 0x1eb   :  { %2503 = vmatpush1.bf16.msra.mxu1 %v2502_v19 }
 0x1ec   :  { %2505 = vmatprep.subr.bf16.mxu1 %v2504_v20 }
 0x1ef   :  { %2507 = vmatpush1.bf16.msra.mxu1 %v2506_v25 }
 0x1f0   :  { %2509 = vmatprep.subr.bf16.mxu1 %v2508_v26 }
 0x1f3   :  { %2511 = vmatpush1.bf16.msra.mxu1 %v2510_v30 }
 0x1f4   :  { %1636 = vmatprep.subr.mxu1 %v1445_v31 }
 0x1f7   :  { %1637 = vmatpush1.msra.mxu1 %v1444_v32 }
 0x1f8   :  { %2512 = vmatprep.subr.bf16.mxu1 %v2572_v33 }
 0x247   :  { %v1273_v38 = vpop.f32.mrb[2].mxu0 }
 0x248   :  { %v2543_v39 = vadd.f32 %v1273_v38, %v605_v36  ;;  %v1275_v40 = vpop.f32.mrb[3].mxu0 }
 0x249   :  { %v2544_v43 = vadd.f32 %v1275_v40, %v609_v37 }
 0x24a   :  { %v1282_v46 = vmax.f32 %v2543_v39, 0.0 }
 0x24b   :  { %v1283_v44 = vmax.f32 %v2544_v43, 0.0 }
 0x24d   :  { %1791 = vmatprep.mubr.msk.f32.mxu1 %vm1458_vm4, %v1283_v44 }
 0x24e   :  { %1669 = vmatmul.mubr.f32.vlgmr.msra.gmra.mrb[2].mxu1 %v1282_v46 }
 0x24f   :  { %2514 = vmatpush1.bf16.msra.mxu1 %v2513_v45 }
 0x250   :  { %2515 = vmatprep.subr.bf16.mxu1 %v2572_v33 }
 0x253   :  { %2517 = vmatpush1.bf16.msra.mxu1 %v2516_v48 }
 0x254   :  { %2518 = vmatprep.subr.bf16.mxu1 %v2572_v33 }
 0x257   :  { %2520 = vmatpush1.bf16.msra.mxu1 %v2519_v50 }
 0x258   :  { %2521 = vmatprep.subr.bf16.mxu1 %v2572_v33 }
 0x25b   :  { %2523 = vmatpush1.bf16.msra.mxu1 %v2522_v56 }
 0x25c   :  { %2524 = vmatprep.subr.bf16.mxu1 %v2572_v33 }
 0x25f   :  { %2526 = vmatpush1.bf16.msra.mxu1 %v2525_v59 }
 0x260   :  { %2527 = vmatprep.subr.bf16.mxu1 %v2572_v33 }
 0x263   :  { %2529 = vmatpush1.bf16.msra.mxu1 %v2528_v62 }
 0x264   :  { %2530 = vmatprep.subr.bf16.mxu1 %v2572_v33 }
 0x267   :  { %2532 = vmatpush1.bf16.msra.mxu1 %v2531_v1 }
 0x268   :  { %2533 = vmatprep.subr.bf16.mxu1 %v2572_v33 }
 0x26b   :  { %2535 = vmatpush1.bf16.msra.mxu1 %v2534_v4 }
 0x26c   :  { %2536 = vmatprep.subr.bf16.mxu1 %v2572_v33 }
 0x26f   :  { %2538 = vmatpush1.bf16.msra.mxu1 %v2537_v7 }
 0x321   :  { %v1670_v11 = vpop.f32.mrb[2].mxu1 }
 0x322   :  { %v2545_v12 = vadd.f32 %v1670_v11, %v1451_v9  ;;  %v1672_v13 = vpop.f32.mrb[3].mxu1 }
 0x323   :  { %v2546_v14 = vadd.f32 %v1672_v13, %v1455_v10 }
 0x324   :  { %v1675_v17 = vmax.f32 %v2545_v12, 0.0 }
 0x325   :  { %v1676_v15 = vmax.f32 %v2546_v14, 0.0 }
 0x327   :  { %1793 = vmatprep.mubr.msk.f32.mxu1 %vm1702_vm5, %v1676_v15 }
 0x328   :  { %1771 = vmatmul.mubr.f32.vlgmr.msra.gmra.mrb[4].mxu1 %v1675_v17 }
 0x3fb   :  { %v1772_v19 = vpop.f32.mrb[4].mxu1 }
 0x3fc   :  { %v1773_v20 = vadd.f32 %v1792_v18, %v1772_v19  ;;  %v1774_v52 = vpop.f32.mrb[5].mxu1 }
 0x3fe   :  { %1777 = vst.msk [vmem:[%s4919_s7] sm:$0xff] %vm1776_vm6, %v1773_v20 }

</bundles_post_ra>
